<compile_context>
chip_gen: v5e
topology: v5e:2x2
jax: 0.10.0
libtpu: 0.0.40
codegen_flags: <defaults>
</compile_context>

<pallas_src>
import functools
import math

import jax
import jax.numpy as jnp
from jax.experimental import pallas as pl
from jax.experimental.pallas import tpu as pltpu

BN_EPS = 1e-5


# --------------------------------------------------------------------------
# Fused Pallas kernel (whole InstanceBranch forward, one batch element / step)
# --------------------------------------------------------------------------
def _make_instance_branch_kernel(num_blocks, H, W, cin0, cin_pad, dim, compute_dtype):
    P = H * W
    PAD = 128 * pl.cdiv(W + 1, 128)   # lane-aligned zero pad each side of flat HW axis

    def kernel(x_ref, w1_ref, b1_ref, w2_ref, b2_ref, wd_ref, bd_ref,
               w_iam_ref, b_iam_ref, w_h_ref, b_h_ref,
               o_heads_ref, o_iam_ref):
        # Column-validity masks, computed once per grid step and reused by every conv.
        col = jax.lax.broadcasted_iota(jnp.int32, (1, P), 1) % W
        # Pre-masking the INPUT is algebraically identical to masking each shifted
        # output slice: dx=-1 taps only ever invalidly read input column W-1, and
        # dx=+1 taps only ever invalidly read input column 0.  2 multiplies per conv
        # instead of 6.
        mask_left_taps = (col <= W - 2).astype(jnp.float32)    # zeroes input col W-1
        mask_right_taps = (col >= 1).astype(jnp.float32)       # zeroes input col 0

        def im2col(x):
            """x: (C, P) f32 -> (9*C, P) compute_dtype patch matrix (tap-major)."""
            c = x.shape[0]
            zeros = jnp.zeros((c, PAD), jnp.float32)
            xp_c = jnp.concatenate([zeros, x, zeros], axis=1)
            xp_l = jnp.concatenate([zeros, x * mask_left_taps, zeros], axis=1)
            xp_r = jnp.concatenate([zeros, x * mask_right_taps, zeros], axis=1)
            rows = []
            for dy in (-1, 0, 1):
                for dx in (-1, 0, 1):
                    src = xp_l if dx == -1 else (xp_r if dx == 1 else xp_c)
                    s = dy * W + dx
                    rows.append(src[:, PAD + s: PAD + s + P])   # static shifted slice
            # Single cast of the stacked patches; all elementwise math stays f32
            # (v5e has no bf16 VPU path).
            return jnp.concatenate(rows, axis=0).astype(compute_dtype)

        def conv3x3(x, w, b):
            """w: (Cout, 9*Cin) packed taps (BN folded), b: (Cout, 1) f32."""
            return jnp.dot(w, im2col(x), preferred_element_type=jnp.float32) + b

        x = x_ref[0].astype(jnp.float32)                 # (cin0, P), lane-dense
        if cin_pad > cin0:                               # zero-pad channels so all
            x = jnp.concatenate(                         # blocks share weight shapes
                [x, jnp.zeros((cin_pad - cin0, P), jnp.float32)], axis=0)

        # Residual (deformable) conv blocks -- BN folded into weights/bias.
        for k in range(num_blocks):
            y = jnp.maximum(conv3x3(x, w1_ref[k], b1_ref[k]), 0.0)   # conv1+BN+ReLU
            y = conv3x3(y, w2_ref[k], b2_ref[k])                     # conv2+BN
            r = jnp.dot(wd_ref[k], x.astype(compute_dtype),          # 1x1 down + BN
                        preferred_element_type=jnp.float32) + bd_ref[k]
            x = jnp.maximum(y + r, 0.0)                              # (dim, P)
            if cin_pad > dim and k + 1 < num_blocks:
                x = jnp.concatenate(
                    [x, jnp.zeros((cin_pad - dim, P), jnp.float32)], axis=0)

        feats = x                                        # (dim, P)

        # IAM conv + instance aggregation.
        iam = conv3x3(feats, w_iam_ref[...], b_iam_ref[...])   # (num_masks, P)
        o_iam_ref[0] = iam

        iam_prob = 1.0 / (1.0 + jnp.exp(-iam))           # sigmoid (EUP)
        denom = jnp.maximum(jnp.sum(iam_prob, axis=1, keepdims=True), 1e-6)
        # Aggregate with UN-normalized probs; row scaling commutes with the
        # contraction, so normalizing the (num_masks, dim) result is exact and far
        # cheaper than normalizing the (num_masks, P) probabilities.
        inst = jax.lax.dot_general(                      # (num_masks, dim) = A @ B^T
            iam_prob.astype(compute_dtype), feats.astype(compute_dtype),
            (((1,), (1,)), ((), ())),
            preferred_element_type=jnp.float32)
        inst = inst / denom

        # Fused heads, lane-padded: columns [cls_score | mask_kernel | objectness | 0].
        heads = jnp.dot(inst.astype(compute_dtype), w_h_ref[...],
                        preferred_element_type=jnp.float32) + b_h_ref[...]
        o_heads_ref[0] = heads

    return kernel


# --------------------------------------------------------------------------
# Wrapper: parameter folding / packing + pallas_call plumbing
# --------------------------------------------------------------------------
def _fold_bn(w_oihw, b_o, bn):
    """Fold inference-mode BatchNorm into a conv's weight and bias."""
    s = bn["gamma"] / jnp.sqrt(bn["var"] + BN_EPS)
    return w_oihw * s[:, None, None, None], (b_o - bn["mean"]) * s + bn["beta"]


def _pack_conv3(w_oihw, cin_pad):
    """(Cout, Cin, 3, 3) -> (Cout, 9*cin_pad); columns are tap-major / cin-minor."""
    co, ci, kh, kw = w_oihw.shape
    if cin_pad > ci:
        w_oihw = jnp.pad(w_oihw, ((0, 0), (0, cin_pad - ci), (0, 0), (0, 0)))
    return jnp.transpose(w_oihw, (0, 2, 3, 1)).reshape(co, kh * kw * cin_pad)


@functools.partial(jax.jit, static_argnames=("use_bf16",))
def instance_branch_forward(x_nchw, params, use_bf16=True):
    B, cin0, H, W = x_nchw.shape
    P = H * W
    num_blocks = len(params["blocks"])
    dim = params["blocks"][0]["conv1"]["w"].shape[0]
    num_masks = params["iam_conv"]["w"].shape[0]
    num_classes = params["cls_score"]["w"].shape[0]
    kernel_dim = params["mask_kernel"]["w"].shape[0]
    n_heads = num_classes + kernel_dim + 1
    h_pad = 128 * pl.cdiv(n_heads, 128)
    cin_pad = max(cin0, dim)

    param_dtype = jnp.bfloat16 if use_bf16 else jnp.float32

    # Stack per-block weights (channel-padded so every block has identical shapes).
    w1s, b1s, w2s, b2s, wds, bds = [], [], [], [], [], []
    for blk in params["blocks"]:
        w1, b1 = _fold_bn(blk["conv1"]["w"], blk["conv1"]["b"], blk["bn1"])
        w2, b2 = _fold_bn(blk["conv2"]["w"], blk["conv2"]["b"], blk["bn2"])
        wd, bd = _fold_bn(blk["down"]["w"], blk["down"]["b"], blk["bn_d"])
        w1s.append(_pack_conv3(w1, cin_pad))
        w2s.append(_pack_conv3(w2, dim))
        wd2 = wd[:, :, 0, 0]
        if cin_pad > wd2.shape[1]:
            wd2 = jnp.pad(wd2, ((0, 0), (0, cin_pad - wd2.shape[1])))
        wds.append(wd2)
        b1s.append(b1.reshape(-1, 1))
        b2s.append(b2.reshape(-1, 1))
        bds.append(bd.reshape(-1, 1))

    w1_all = jnp.stack(w1s).astype(param_dtype)      # (nb, dim, 9*cin_pad)
    w2_all = jnp.stack(w2s).astype(param_dtype)      # (nb, dim, 9*dim)
    wd_all = jnp.stack(wds).astype(param_dtype)      # (nb, dim, cin_pad)
    b1_all = jnp.stack(b1s)                          # (nb, dim, 1) f32
    b2_all = jnp.stack(b2s)
    bd_all = jnp.stack(bds)

    w_iam = _pack_conv3(params["iam_conv"]["w"], dim).astype(param_dtype)
    b_iam = params["iam_conv"]["b"].reshape(-1, 1)

    w_heads = jnp.concatenate(
        [params["cls_score"]["w"].T, params["mask_kernel"]["w"].T,
         params["objectness"]["w"].T], axis=1)                     # (dim, n_heads)
    w_heads = jnp.pad(w_heads, ((0, 0), (0, h_pad - n_heads))).astype(param_dtype)
    b_heads = jnp.pad(
        jnp.concatenate([params["cls_score"]["b"], params["mask_kernel"]["b"],
                         params["objectness"]["b"]]),
        (0, h_pad - n_heads)).reshape(1, h_pad)

    # NCHW consumed directly: lanes = flattened H*W (no layout transposes).
    x = x_nchw.reshape(B, cin0, P)

    inputs = (x, w1_all, b1_all, w2_all, b2_all, wd_all, bd_all,
              w_iam, b_iam, w_heads, b_heads)

    def full_spec(shape):
        return pl.BlockSpec(shape, lambda n, _nd=len(shape): (0,) * _nd)

    in_specs = [pl.BlockSpec((1, cin0, P), lambda n: (n, 0, 0))]
    in_specs += [full_spec(a.shape) for a in inputs[1:]]

    out_shape = (
        jax.ShapeDtypeStruct((B, num_masks, h_pad), jnp.float32),   # fused heads
        jax.ShapeDtypeStruct((B, num_masks, P), jnp.float32),       # lane-dense iam
    )
    out_specs = [
        pl.BlockSpec((1, num_masks, h_pad), lambda n: (n, 0, 0)),
        pl.BlockSpec((1, num_masks, P), lambda n: (n, 0, 0)),
    ]

    # Explicit VMEM budget sized from the actual footprint (with margin, capped at
    # v7x physical 64 MiB).
    def nbytes(a):
        return math.prod(a.shape) * a.dtype.itemsize
    weight_bytes = sum(nbytes(a) for a in inputs[1:])
    io_block_bytes = cin0 * P * 4 + num_masks * (h_pad + P) * 4
    act_bytes = (9 * max(cin_pad, dim) * 4 + 8 * max(cin_pad, dim, num_masks)) * P * 4
    vmem_limit = int(min(64 * 2 ** 20,
                         max(24 * 2 ** 20,
                             2 * (weight_bytes + io_block_bytes) + 2 * act_bytes)))

    kernel = _make_instance_branch_kernel(
        num_blocks, H, W, cin0, cin_pad, dim,
        jnp.bfloat16 if use_bf16 else jnp.float32)

    heads, iam = pl.pallas_call(
        kernel,
        out_shape=out_shape,
        grid_spec=pltpu.PrefetchScalarGridSpec(
            num_scalar_prefetch=0,
            grid=(B,),
            in_specs=in_specs,
            out_specs=out_specs,
        ),
        compiler_params=pltpu.CompilerParams(
            dimension_semantics=("parallel",),
            vmem_limit_bytes=vmem_limit),
    )(*inputs)

    pred_logits = heads[:, :, :num_classes]
    pred_kernel = heads[:, :, num_classes:num_classes + kernel_dim]
    pred_scores = heads[:, :, num_classes + kernel_dim:n_heads]
    return pred_logits, pred_kernel, pred_scores, iam.reshape(B, num_masks, H, W)


# --------------------------------------------------------------------------
# Parameter init (mirrors InstanceBranch._init_weights)
# --------------------------------------------------------------------------
def _msra_conv(key, cout, cin, kh, kw):
    fan_out = cout * kh * kw                       # c2_msra_fill: kaiming fan_out, relu
    std = math.sqrt(2.0 / fan_out)
    w = std * jax.random.normal(key, (cout, cin, kh, kw), jnp.float32)
    return w, jnp.zeros((cout,), jnp.float32)


def _bn_params(key, c):
    k1, k2, k3, k4 = jax.random.split(key, 4)
    return {
        "gamma": 1.0 + 0.2 * jax.random.normal(k1, (c,), jnp.float32),
        "beta": 0.1 * jax.random.normal(k2, (c,), jnp.float32),
        "mean": 0.1 * jax.random.normal(k3, (c,), jnp.float32),
        "var": jax.random.uniform(k4, (c,), jnp.float32, 0.5, 1.5),
    }


def init_instance_branch_params(key, in_channels, dim, num_blocks, num_masks,
                                num_classes, kernel_dim, prior_prob=0.01):
    blocks = []
    cin = in_channels
    for _ in range(num_blocks):
        key, k1, k2, k3, kb1, kb2, kb3 = jax.random.split(key, 7)
        w1, b1 = _msra_conv(k1, dim, cin, 3, 3)
        w2, b2 = _msra_conv(k2, dim, dim, 3, 3)
        wd, bd = _msra_conv(k3, dim, cin, 1, 1)
        blocks.append({
            "conv1": {"w": w1, "b": b1}, "bn1": _bn_params(kb1, dim),
            "conv2": {"w": w2, "b": b2}, "bn2": _bn_params(kb2, dim),
            "down": {"w": wd, "b": bd}, "bn_d": _bn_params(kb3, dim),
        })
        cin = dim

    bias_value = -math.log((1 - prior_prob) / prior_prob)
    key, k_iam, k_cls, k_mk, k_ow, k_ob = jax.random.split(key, 6)
    bound = 1.0 / math.sqrt(dim)                   # nn.Linear default init for objectness
    return {
        "blocks": blocks,
        "iam_conv": {"w": 0.01 * jax.random.normal(k_iam, (num_masks, dim, 3, 3), jnp.float32),
                     "b": jnp.full((num_masks,), bias_value, jnp.float32)},
        "cls_score": {"w": 0.01 * jax.random.normal(k_cls, (num_classes, dim), jnp.float32),
                      "b": jnp.full((num_classes,), bias_value, jnp.float32)},
        "mask_kernel": {"w": 0.01 * jax.random.normal(k_mk, (kernel_dim, dim), jnp.float32),
                        "b": jnp.zeros((kernel_dim,), jnp.float32)},
        "objectness": {"w": jax.random.uniform(k_ow, (1, dim), jnp.float32, -bound, bound),
                       "b": jax.random.uniform(k_ob, (1,), jnp.float32, -bound, bound)},
    }


# --------------------------------------------------------------------------
# Pure-JAX reference (NCHW, un-folded BN) for correctness checking
# --------------------------------------------------------------------------
def _conv2d_ref(x, w, b, padding):
    y = jax.lax.conv_general_dilated(
        x, w, window_strides=(1, 1),
        padding=((padding, padding), (padding, padding)),
        dimension_numbers=("NCHW", "OIHW", "NCHW"))
    return y + b.reshape(1, -1, 1, 1)


def _bn_ref(x, bn):
    g, bt = bn["gamma"].reshape(1, -1, 1, 1), bn["beta"].reshape(1, -1, 1, 1)
    m, v = bn["mean"].reshape(1, -1, 1, 1), bn["var"].reshape(1, -1, 1, 1)
    return (x - m) / jnp.sqrt(v + BN_EPS) * g + bt


def instance_branch_reference(x, params):
    with jax.default_matmul_precision("highest"):
        for blk in params["blocks"]:
            y = jax.nn.relu(_bn_ref(_conv2d_ref(x, blk["conv1"]["w"],
                                                blk["conv1"]["b"], 1), blk["bn1"]))
            y = _bn_ref(_conv2d_ref(y, blk["conv2"]["w"], blk["conv2"]["b"], 1), blk["bn2"])
            r = _bn_ref(_conv2d_ref(x, blk["down"]["w"], blk["down"]["b"], 0), blk["bn_d"])
            x = jax.nn.relu(y + r)
        feats = x
        iam = _conv2d_ref(feats, params["iam_conv"]["w"], params["iam_conv"]["b"], 1)
        B, N = iam.shape[:2]
        C = feats.shape[1]
        iam_prob = jax.nn.sigmoid(iam).reshape(B, N, -1)
        normalizer = jnp.maximum(iam_prob.sum(-1), 1e-6)
        iam_prob = iam_prob / normalizer[:, :, None]
        inst = jnp.einsum("bnp,bcp->bnc", iam_prob, feats.reshape(B, C, -1))
        logits = inst @ params["cls_score"]["w"].T + params["cls_score"]["b"]
        kern = inst @ params["mask_kernel"]["w"].T + params["mask_kernel"]["b"]
        scores = inst @ params["objectness"]["w"].T + params["objectness"]["b"]
        return logits, kern, scores, iam


if __name__ == "__main__":
    # Small config consistent with the module:
    #   in_channels=4, INST.DIM=8, INST.CONVS=2, NUM_MASKS=8, KERNEL_DIM=8, NUM_CLASSES=5
    B, IN_CHANNELS, H, W = 2, 4, 16, 16
    DIM, NUM_CONVS = 8, 2
    NUM_MASKS, KERNEL_DIM, NUM_CLASSES = 8, 8, 5

    key = jax.random.PRNGKey(0)
    key, xkey, pkey = jax.random.split(key, 3)
    x = jax.random.normal(xkey, (B, IN_CHANNELS, H, W), jnp.float32)
    params = init_instance_branch_params(pkey, IN_CHANNELS, DIM, NUM_CONVS,
                                         NUM_MASKS, NUM_CLASSES, KERNEL_DIM)

    refs = instance_branch_reference(x, params)
    names = ("pred_logits", "pred_kernel", "pred_scores", "iam")
    expected = ((B, NUM_MASKS, NUM_CLASSES), (B, NUM_MASKS, KERNEL_DIM),
                (B, NUM_MASKS, 1), (B, NUM_MASKS, H, W))

    # f32 matmul-operand path: tight tolerance vs the highest-precision reference.
    outs_f32 = jax.block_until_ready(instance_branch_forward(x, params, use_bf16=False))
    for name, o, r, es in zip(names, outs_f32, refs, expected):
        assert o.shape == es, (name, o.shape, es)
        err = float(jnp.max(jnp.abs(o - r)))
        assert jnp.allclose(o, r, atol=5e-4, rtol=5e-4), ("f32", name, err)

    # bf16 matmul-operand path (f32 accumulation, recommended on v6e/v7x): relaxed
    # tolerance re-derived for bf16 operand rounding.
    outs_bf16 = jax.block_until_ready(instance_branch_forward(x, params, use_bf16=True))
    for name, o, r, es in zip(names, outs_bf16, refs, expected):
        assert o.shape == es, (name, o.shape, es)
        err = float(jnp.max(jnp.abs(o - r)))
        assert jnp.allclose(o, r, atol=1e-1, rtol=1e-1), ("bf16", name, err)

    print("KERNEL_OK")
</pallas_src>

<mosaic_0001>
module attributes {stable_mosaic.version = 11 : i64} {
  func.func @kernel(%arg0: i32, %arg1: memref<1x4x256xf32, #tpu.memory_space<vmem>>, %arg2: memref<2x8x72xf32, #tpu.memory_space<vmem>>, %arg3: memref<2x8x1xf32, #tpu.memory_space<vmem>>, %arg4: memref<2x8x72xf32, #tpu.memory_space<vmem>>, %arg5: memref<2x8x1xf32, #tpu.memory_space<vmem>>, %arg6: memref<2x8x8xf32, #tpu.memory_space<vmem>>, %arg7: memref<2x8x1xf32, #tpu.memory_space<vmem>>, %arg8: memref<8x72xf32, #tpu.memory_space<vmem>>, %arg9: memref<8x1xf32, #tpu.memory_space<vmem>>, %arg10: memref<8x128xf32, #tpu.memory_space<vmem>>, %arg11: memref<1x128xf32, #tpu.memory_space<vmem>>, %arg12: memref<1x8x128xf32, #tpu.memory_space<vmem>>, %arg13: memref<1x8x256xf32, #tpu.memory_space<vmem>>) attributes {dimension_semantics = [#tpu.dimension_semantics<parallel>], iteration_bounds = array<i64: 2>, scalar_prefetch = 0 : i64, scratch_operands = 0 : i64, tpu.core_type = #tpu.core_type<tc>, window_params = [{transform_indices = @transform_0, window_bounds = array<i64: 1, 4, 256>}, {pipeline_mode = #tpu.pipeline_mode<synchronous>, transform_indices = @transform_1, window_bounds = array<i64: 2, 8, 72>}, {pipeline_mode = #tpu.pipeline_mode<synchronous>, transform_indices = @transform_2, window_bounds = array<i64: 2, 8, 1>}, {pipeline_mode = #tpu.pipeline_mode<synchronous>, transform_indices = @transform_3, window_bounds = array<i64: 2, 8, 72>}, {pipeline_mode = #tpu.pipeline_mode<synchronous>, transform_indices = @transform_4, window_bounds = array<i64: 2, 8, 1>}, {pipeline_mode = #tpu.pipeline_mode<synchronous>, transform_indices = @transform_5, window_bounds = array<i64: 2, 8, 8>}, {pipeline_mode = #tpu.pipeline_mode<synchronous>, transform_indices = @transform_6, window_bounds = array<i64: 2, 8, 1>}, {pipeline_mode = #tpu.pipeline_mode<synchronous>, transform_indices = @transform_7, window_bounds = array<i64: 8, 72>}, {pipeline_mode = #tpu.pipeline_mode<synchronous>, transform_indices = @transform_8, window_bounds = array<i64: 8, 1>}, {pipeline_mode = #tpu.pipeline_mode<synchronous>, transform_indices = @transform_9, window_bounds = array<i64: 8, 128>}, {pipeline_mode = #tpu.pipeline_mode<synchronous>, transform_indices = @transform_10, window_bounds = array<i64: 1, 128>}, {transform_indices = @transform_11, window_bounds = array<i64: 1, 8, 128>}, {transform_indices = @transform_12, window_bounds = array<i64: 1, 8, 256>}]} {
    %0 = tpu.iota {dimensions = array<i32: 1>} : vector<1x256xi32>
    %c16_i32 = arith.constant 16 : i32
    %c0_i32 = arith.constant 0 : i32
    %1 = arith.cmpi eq, %c16_i32, %c0_i32 : i32
    %c1_i32 = arith.constant 1 : i32
    %2 = arith.select %1, %c1_i32, %c16_i32 : i32
    %3 = vector.broadcast %2 : i32 to vector<1x256xi32>
    %4 = arith.remsi %0, %3 : vector<1x256xi32>
    %c0_i32_0 = arith.constant 0 : i32
    %5 = vector.broadcast %c0_i32_0 : i32 to vector<1x256xi32>
    %6 = arith.cmpi ne, %4, %5 : vector<1x256xi32>
    %c0_i32_1 = arith.constant 0 : i32
    %7 = vector.broadcast %c0_i32_1 : i32 to vector<1x256xi32>
    %8 = arith.cmpi slt, %4, %7 : vector<1x256xi32>
    %c0_i32_2 = arith.constant 0 : i32
    %9 = arith.cmpi slt, %2, %c0_i32_2 : i32
    %10 = vector.broadcast %9 : i1 to vector<1x256xi1>
    %11 = vector.broadcast %10 : vector<1x256xi1> to vector<1x256xi1>
    %12 = arith.xori %8, %11 : vector<1x256xi1>
    %13 = arith.andi %12, %6 : vector<1x256xi1>
    %14 = vector.broadcast %2 : i32 to vector<1x256xi32>
    %15 = arith.addi %4, %14 : vector<1x256xi32>
    %16 = arith.select %13, %15, %4 : vector<1x256xi1>, vector<1x256xi32>
    %c14_i32 = arith.constant 14 : i32
    %17 = vector.broadcast %c14_i32 : i32 to vector<1x256xi32>
    %18 = arith.cmpi sle, %16, %17 : vector<1x256xi32>
    %19 = arith.extui %18 : vector<1x256xi1> to vector<1x256xi32>
    %20 = arith.sitofp %19 : vector<1x256xi32> to vector<1x256xf32>
    %c1_i32_3 = arith.constant 1 : i32
    %21 = vector.broadcast %c1_i32_3 : i32 to vector<1x256xi32>
    %22 = arith.cmpi sge, %16, %21 : vector<1x256xi32>
    %23 = arith.extui %22 : vector<1x256xi1> to vector<1x256xi32>
    %24 = arith.sitofp %23 : vector<1x256xi32> to vector<1x256xf32>
    %c0 = arith.constant 0 : index
    %c0_4 = arith.constant 0 : index
    %c0_5 = arith.constant 0 : index
    %25 = vector.load %arg1[%c0, %c0_4, %c0_5] : memref<1x4x256xf32, #tpu.memory_space<vmem>>, vector<1x4x256xf32>
    %26 = vector.shape_cast %25 : vector<1x4x256xf32> to vector<4x256xf32>
    %cst = arith.constant 0.000000e+00 : f32
    %27 = vector.broadcast %cst : f32 to vector<4x256xf32>
    %28 = tpu.concatenate %26, %27 in 0 : vector<4x256xf32>, vector<4x256xf32> -> vector<8x256xf32>
    %c0_6 = arith.constant 0 : index
    %c0_7 = arith.constant 0 : index
    %c0_8 = arith.constant 0 : index
    %29 = vector.load %arg2[%c0_6, %c0_7, %c0_8] : memref<2x8x72xf32, #tpu.memory_space<vmem>>, vector<1x8x72xf32>
    %30 = vector.shape_cast %29 : vector<1x8x72xf32> to vector<8x72xf32>
    %c0_9 = arith.constant 0 : index
    %c0_10 = arith.constant 0 : index
    %c0_11 = arith.constant 0 : index
    %31 = vector.load %arg3[%c0_9, %c0_10, %c0_11] : memref<2x8x1xf32, #tpu.memory_space<vmem>>, vector<1x8x1xf32>
    %32 = vector.shape_cast %31 : vector<1x8x1xf32> to vector<8x1xf32>
    %cst_12 = arith.constant 0.000000e+00 : f32
    %33 = vector.broadcast %cst_12 : f32 to vector<8x128xf32>
    %34 = tpu.concatenate %33, %28, %33 in 1 : vector<8x128xf32>, vector<8x256xf32>, vector<8x128xf32> -> vector<8x512xf32>
    %35 = vector.broadcast %20 : vector<1x256xf32> to vector<8x256xf32>
    %36 = arith.mulf %28, %35 : vector<8x256xf32>
    %37 = tpu.concatenate %33, %36, %33 in 1 : vector<8x128xf32>, vector<8x256xf32>, vector<8x128xf32> -> vector<8x512xf32>
    %38 = vector.broadcast %24 : vector<1x256xf32> to vector<8x256xf32>
    %39 = arith.mulf %28, %38 : vector<8x256xf32>
    %40 = tpu.concatenate %33, %39, %33 in 1 : vector<8x128xf32>, vector<8x256xf32>, vector<8x128xf32> -> vector<8x512xf32>
    %41 = vector.extract_strided_slice %37 {offsets = [0, 111], sizes = [8, 256], strides = [1, 1]} : vector<8x512xf32> to vector<8x256xf32>
    %42 = vector.extract_strided_slice %34 {offsets = [0, 112], sizes = [8, 256], strides = [1, 1]} : vector<8x512xf32> to vector<8x256xf32>
    %43 = vector.extract_strided_slice %40 {offsets = [0, 113], sizes = [8, 256], strides = [1, 1]} : vector<8x512xf32> to vector<8x256xf32>
    %44 = vector.extract_strided_slice %37 {offsets = [0, 127], sizes = [8, 256], strides = [1, 1]} : vector<8x512xf32> to vector<8x256xf32>
    %45 = vector.extract_strided_slice %34 {offsets = [0, 128], sizes = [8, 256], strides = [1, 1]} : vector<8x512xf32> to vector<8x256xf32>
    %46 = vector.extract_strided_slice %40 {offsets = [0, 129], sizes = [8, 256], strides = [1, 1]} : vector<8x512xf32> to vector<8x256xf32>
    %47 = vector.extract_strided_slice %37 {offsets = [0, 143], sizes = [8, 256], strides = [1, 1]} : vector<8x512xf32> to vector<8x256xf32>
    %48 = vector.extract_strided_slice %34 {offsets = [0, 144], sizes = [8, 256], strides = [1, 1]} : vector<8x512xf32> to vector<8x256xf32>
    %49 = vector.extract_strided_slice %40 {offsets = [0, 145], sizes = [8, 256], strides = [1, 1]} : vector<8x512xf32> to vector<8x256xf32>
    %50 = tpu.concatenate %41, %42, %43, %44, %45, %46, %47, %48, %49 in 0 : vector<8x256xf32>, vector<8x256xf32>, vector<8x256xf32>, vector<8x256xf32>, vector<8x256xf32>, vector<8x256xf32>, vector<8x256xf32>, vector<8x256xf32>, vector<8x256xf32> -> vector<72x256xf32>
    %cst_13 = arith.constant dense<0.000000e+00> : vector<8x256xf32>
    %51 = tpu.matmul %30, %50, %cst_13 {dimension_numbers = #tpu.dot_dimension_numbers<[1], [0], [0], [1], [0, 0, 1, 1], [], []>} : vector<8x72xf32>, vector<72x256xf32>, vector<8x256xf32> -> vector<8x256xf32>
    %52 = vector.broadcast %32 : vector<8x1xf32> to vector<8x256xf32>
    %53 = arith.addf %51, %52 : vector<8x256xf32>
    %cst_14 = arith.constant 0.000000e+00 : f32
    %54 = vector.broadcast %cst_14 : f32 to vector<8x256xf32>
    %55 = arith.maximumf %53, %54 : vector<8x256xf32>
    %c0_15 = arith.constant 0 : index
    %c0_16 = arith.constant 0 : index
    %c0_17 = arith.constant 0 : index
    %56 = vector.load %arg4[%c0_15, %c0_16, %c0_17] : memref<2x8x72xf32, #tpu.memory_space<vmem>>, vector<1x8x72xf32>
    %57 = vector.shape_cast %56 : vector<1x8x72xf32> to vector<8x72xf32>
    %c0_18 = arith.constant 0 : index
    %c0_19 = arith.constant 0 : index
    %c0_20 = arith.constant 0 : index
    %58 = vector.load %arg5[%c0_18, %c0_19, %c0_20] : memref<2x8x1xf32, #tpu.memory_space<vmem>>, vector<1x8x1xf32>
    %59 = vector.shape_cast %58 : vector<1x8x1xf32> to vector<8x1xf32>
    %cst_21 = arith.constant 0.000000e+00 : f32
    %60 = vector.broadcast %cst_21 : f32 to vector<8x128xf32>
    %61 = tpu.concatenate %60, %55, %60 in 1 : vector<8x128xf32>, vector<8x256xf32>, vector<8x128xf32> -> vector<8x512xf32>
    %62 = vector.broadcast %20 : vector<1x256xf32> to vector<8x256xf32>
    %63 = arith.mulf %55, %62 : vector<8x256xf32>
    %64 = tpu.concatenate %60, %63, %60 in 1 : vector<8x128xf32>, vector<8x256xf32>, vector<8x128xf32> -> vector<8x512xf32>
    %65 = vector.broadcast %24 : vector<1x256xf32> to vector<8x256xf32>
    %66 = arith.mulf %55, %65 : vector<8x256xf32>
    %67 = tpu.concatenate %60, %66, %60 in 1 : vector<8x128xf32>, vector<8x256xf32>, vector<8x128xf32> -> vector<8x512xf32>
    %68 = vector.extract_strided_slice %64 {offsets = [0, 111], sizes = [8, 256], strides = [1, 1]} : vector<8x512xf32> to vector<8x256xf32>
    %69 = vector.extract_strided_slice %61 {offsets = [0, 112], sizes = [8, 256], strides = [1, 1]} : vector<8x512xf32> to vector<8x256xf32>
    %70 = vector.extract_strided_slice %67 {offsets = [0, 113], sizes = [8, 256], strides = [1, 1]} : vector<8x512xf32> to vector<8x256xf32>
    %71 = vector.extract_strided_slice %64 {offsets = [0, 127], sizes = [8, 256], strides = [1, 1]} : vector<8x512xf32> to vector<8x256xf32>
    %72 = vector.extract_strided_slice %61 {offsets = [0, 128], sizes = [8, 256], strides = [1, 1]} : vector<8x512xf32> to vector<8x256xf32>
    %73 = vector.extract_strided_slice %67 {offsets = [0, 129], sizes = [8, 256], strides = [1, 1]} : vector<8x512xf32> to vector<8x256xf32>
    %74 = vector.extract_strided_slice %64 {offsets = [0, 143], sizes = [8, 256], strides = [1, 1]} : vector<8x512xf32> to vector<8x256xf32>
    %75 = vector.extract_strided_slice %61 {offsets = [0, 144], sizes = [8, 256], strides = [1, 1]} : vector<8x512xf32> to vector<8x256xf32>
    %76 = vector.extract_strided_slice %67 {offsets = [0, 145], sizes = [8, 256], strides = [1, 1]} : vector<8x512xf32> to vector<8x256xf32>
    %77 = tpu.concatenate %68, %69, %70, %71, %72, %73, %74, %75, %76 in 0 : vector<8x256xf32>, vector<8x256xf32>, vector<8x256xf32>, vector<8x256xf32>, vector<8x256xf32>, vector<8x256xf32>, vector<8x256xf32>, vector<8x256xf32>, vector<8x256xf32> -> vector<72x256xf32>
    %cst_22 = arith.constant dense<0.000000e+00> : vector<8x256xf32>
    %78 = tpu.matmul %57, %77, %cst_22 {dimension_numbers = #tpu.dot_dimension_numbers<[1], [0], [0], [1], [0, 0, 1, 1], [], []>} : vector<8x72xf32>, vector<72x256xf32>, vector<8x256xf32> -> vector<8x256xf32>
    %79 = vector.broadcast %59 : vector<8x1xf32> to vector<8x256xf32>
    %80 = arith.addf %78, %79 : vector<8x256xf32>
    %c0_23 = arith.constant 0 : index
    %c0_24 = arith.constant 0 : index
    %c0_25 = arith.constant 0 : index
    %81 = vector.load %arg6[%c0_23, %c0_24, %c0_25] : memref<2x8x8xf32, #tpu.memory_space<vmem>>, vector<1x8x8xf32>
    %82 = vector.shape_cast %81 : vector<1x8x8xf32> to vector<8x8xf32>
    %cst_26 = arith.constant dense<0.000000e+00> : vector<8x256xf32>
    %83 = tpu.matmul %82, %28, %cst_26 {dimension_numbers = #tpu.dot_dimension_numbers<[1], [0], [0], [1], [0, 0, 1, 1], [], []>} : vector<8x8xf32>, vector<8x256xf32>, vector<8x256xf32> -> vector<8x256xf32>
    %c0_27 = arith.constant 0 : index
    %c0_28 = arith.constant 0 : index
    %c0_29 = arith.constant 0 : index
    %84 = vector.load %arg7[%c0_27, %c0_28, %c0_29] : memref<2x8x1xf32, #tpu.memory_space<vmem>>, vector<1x8x1xf32>
    %85 = vector.shape_cast %84 : vector<1x8x1xf32> to vector<8x1xf32>
    %86 = vector.broadcast %85 : vector<8x1xf32> to vector<8x256xf32>
    %87 = arith.addf %83, %86 : vector<8x256xf32>
    %88 = arith.addf %80, %87 : vector<8x256xf32>
    %cst_30 = arith.constant 0.000000e+00 : f32
    %89 = vector.broadcast %cst_30 : f32 to vector<8x256xf32>
    %90 = arith.maximumf %88, %89 : vector<8x256xf32>
    %c1 = arith.constant 1 : index
    %c0_31 = arith.constant 0 : index
    %c0_32 = arith.constant 0 : index
    %91 = vector.load %arg2[%c1, %c0_31, %c0_32] : memref<2x8x72xf32, #tpu.memory_space<vmem>>, vector<1x8x72xf32>
    %92 = vector.shape_cast %91 : vector<1x8x72xf32> to vector<8x72xf32>
    %c1_33 = arith.constant 1 : index
    %c0_34 = arith.constant 0 : index
    %c0_35 = arith.constant 0 : index
    %93 = vector.load %arg3[%c1_33, %c0_34, %c0_35] : memref<2x8x1xf32, #tpu.memory_space<vmem>>, vector<1x8x1xf32>
    %94 = vector.shape_cast %93 : vector<1x8x1xf32> to vector<8x1xf32>
    %cst_36 = arith.constant 0.000000e+00 : f32
    %95 = vector.broadcast %cst_36 : f32 to vector<8x128xf32>
    %96 = tpu.concatenate %95, %90, %95 in 1 : vector<8x128xf32>, vector<8x256xf32>, vector<8x128xf32> -> vector<8x512xf32>
    %97 = vector.broadcast %20 : vector<1x256xf32> to vector<8x256xf32>
    %98 = arith.mulf %90, %97 : vector<8x256xf32>
    %99 = tpu.concatenate %95, %98, %95 in 1 : vector<8x128xf32>, vector<8x256xf32>, vector<8x128xf32> -> vector<8x512xf32>
    %100 = vector.broadcast %24 : vector<1x256xf32> to vector<8x256xf32>
    %101 = arith.mulf %90, %100 : vector<8x256xf32>
    %102 = tpu.concatenate %95, %101, %95 in 1 : vector<8x128xf32>, vector<8x256xf32>, vector<8x128xf32> -> vector<8x512xf32>
    %103 = vector.extract_strided_slice %99 {offsets = [0, 111], sizes = [8, 256], strides = [1, 1]} : vector<8x512xf32> to vector<8x256xf32>
    %104 = vector.extract_strided_slice %96 {offsets = [0, 112], sizes = [8, 256], strides = [1, 1]} : vector<8x512xf32> to vector<8x256xf32>
    %105 = vector.extract_strided_slice %102 {offsets = [0, 113], sizes = [8, 256], strides = [1, 1]} : vector<8x512xf32> to vector<8x256xf32>
    %106 = vector.extract_strided_slice %99 {offsets = [0, 127], sizes = [8, 256], strides = [1, 1]} : vector<8x512xf32> to vector<8x256xf32>
    %107 = vector.extract_strided_slice %96 {offsets = [0, 128], sizes = [8, 256], strides = [1, 1]} : vector<8x512xf32> to vector<8x256xf32>
    %108 = vector.extract_strided_slice %102 {offsets = [0, 129], sizes = [8, 256], strides = [1, 1]} : vector<8x512xf32> to vector<8x256xf32>
    %109 = vector.extract_strided_slice %99 {offsets = [0, 143], sizes = [8, 256], strides = [1, 1]} : vector<8x512xf32> to vector<8x256xf32>
    %110 = vector.extract_strided_slice %96 {offsets = [0, 144], sizes = [8, 256], strides = [1, 1]} : vector<8x512xf32> to vector<8x256xf32>
    %111 = vector.extract_strided_slice %102 {offsets = [0, 145], sizes = [8, 256], strides = [1, 1]} : vector<8x512xf32> to vector<8x256xf32>
    %112 = tpu.concatenate %103, %104, %105, %106, %107, %108, %109, %110, %111 in 0 : vector<8x256xf32>, vector<8x256xf32>, vector<8x256xf32>, vector<8x256xf32>, vector<8x256xf32>, vector<8x256xf32>, vector<8x256xf32>, vector<8x256xf32>, vector<8x256xf32> -> vector<72x256xf32>
    %cst_37 = arith.constant dense<0.000000e+00> : vector<8x256xf32>
    %113 = tpu.matmul %92, %112, %cst_37 {dimension_numbers = #tpu.dot_dimension_numbers<[1], [0], [0], [1], [0, 0, 1, 1], [], []>} : vector<8x72xf32>, vector<72x256xf32>, vector<8x256xf32> -> vector<8x256xf32>
    %114 = vector.broadcast %94 : vector<8x1xf32> to vector<8x256xf32>
    %115 = arith.addf %113, %114 : vector<8x256xf32>
    %cst_38 = arith.constant 0.000000e+00 : f32
    %116 = vector.broadcast %cst_38 : f32 to vector<8x256xf32>
    %117 = arith.maximumf %115, %116 : vector<8x256xf32>
    %c1_39 = arith.constant 1 : index
    %c0_40 = arith.constant 0 : index
    %c0_41 = arith.constant 0 : index
    %118 = vector.load %arg4[%c1_39, %c0_40, %c0_41] : memref<2x8x72xf32, #tpu.memory_space<vmem>>, vector<1x8x72xf32>
    %119 = vector.shape_cast %118 : vector<1x8x72xf32> to vector<8x72xf32>
    %c1_42 = arith.constant 1 : index
    %c0_43 = arith.constant 0 : index
    %c0_44 = arith.constant 0 : index
    %120 = vector.load %arg5[%c1_42, %c0_43, %c0_44] : memref<2x8x1xf32, #tpu.memory_space<vmem>>, vector<1x8x1xf32>
    %121 = vector.shape_cast %120 : vector<1x8x1xf32> to vector<8x1xf32>
    %cst_45 = arith.constant 0.000000e+00 : f32
    %122 = vector.broadcast %cst_45 : f32 to vector<8x128xf32>
    %123 = tpu.concatenate %122, %117, %122 in 1 : vector<8x128xf32>, vector<8x256xf32>, vector<8x128xf32> -> vector<8x512xf32>
    %124 = vector.broadcast %20 : vector<1x256xf32> to vector<8x256xf32>
    %125 = arith.mulf %117, %124 : vector<8x256xf32>
    %126 = tpu.concatenate %122, %125, %122 in 1 : vector<8x128xf32>, vector<8x256xf32>, vector<8x128xf32> -> vector<8x512xf32>
    %127 = vector.broadcast %24 : vector<1x256xf32> to vector<8x256xf32>
    %128 = arith.mulf %117, %127 : vector<8x256xf32>
    %129 = tpu.concatenate %122, %128, %122 in 1 : vector<8x128xf32>, vector<8x256xf32>, vector<8x128xf32> -> vector<8x512xf32>
    %130 = vector.extract_strided_slice %126 {offsets = [0, 111], sizes = [8, 256], strides = [1, 1]} : vector<8x512xf32> to vector<8x256xf32>
    %131 = vector.extract_strided_slice %123 {offsets = [0, 112], sizes = [8, 256], strides = [1, 1]} : vector<8x512xf32> to vector<8x256xf32>
    %132 = vector.extract_strided_slice %129 {offsets = [0, 113], sizes = [8, 256], strides = [1, 1]} : vector<8x512xf32> to vector<8x256xf32>
    %133 = vector.extract_strided_slice %126 {offsets = [0, 127], sizes = [8, 256], strides = [1, 1]} : vector<8x512xf32> to vector<8x256xf32>
    %134 = vector.extract_strided_slice %123 {offsets = [0, 128], sizes = [8, 256], strides = [1, 1]} : vector<8x512xf32> to vector<8x256xf32>
    %135 = vector.extract_strided_slice %129 {offsets = [0, 129], sizes = [8, 256], strides = [1, 1]} : vector<8x512xf32> to vector<8x256xf32>
    %136 = vector.extract_strided_slice %126 {offsets = [0, 143], sizes = [8, 256], strides = [1, 1]} : vector<8x512xf32> to vector<8x256xf32>
    %137 = vector.extract_strided_slice %123 {offsets = [0, 144], sizes = [8, 256], strides = [1, 1]} : vector<8x512xf32> to vector<8x256xf32>
    %138 = vector.extract_strided_slice %129 {offsets = [0, 145], sizes = [8, 256], strides = [1, 1]} : vector<8x512xf32> to vector<8x256xf32>
    %139 = tpu.concatenate %130, %131, %132, %133, %134, %135, %136, %137, %138 in 0 : vector<8x256xf32>, vector<8x256xf32>, vector<8x256xf32>, vector<8x256xf32>, vector<8x256xf32>, vector<8x256xf32>, vector<8x256xf32>, vector<8x256xf32>, vector<8x256xf32> -> vector<72x256xf32>
    %cst_46 = arith.constant dense<0.000000e+00> : vector<8x256xf32>
    %140 = tpu.matmul %119, %139, %cst_46 {dimension_numbers = #tpu.dot_dimension_numbers<[1], [0], [0], [1], [0, 0, 1, 1], [], []>} : vector<8x72xf32>, vector<72x256xf32>, vector<8x256xf32> -> vector<8x256xf32>
    %141 = vector.broadcast %121 : vector<8x1xf32> to vector<8x256xf32>
    %142 = arith.addf %140, %141 : vector<8x256xf32>
    %c1_47 = arith.constant 1 : index
    %c0_48 = arith.constant 0 : index
    %c0_49 = arith.constant 0 : index
    %143 = vector.load %arg6[%c1_47, %c0_48, %c0_49] : memref<2x8x8xf32, #tpu.memory_space<vmem>>, vector<1x8x8xf32>
    %144 = vector.shape_cast %143 : vector<1x8x8xf32> to vector<8x8xf32>
    %cst_50 = arith.constant dense<0.000000e+00> : vector<8x256xf32>
    %145 = tpu.matmul %144, %90, %cst_50 {dimension_numbers = #tpu.dot_dimension_numbers<[1], [0], [0], [1], [0, 0, 1, 1], [], []>} : vector<8x8xf32>, vector<8x256xf32>, vector<8x256xf32> -> vector<8x256xf32>
    %c1_51 = arith.constant 1 : index
    %c0_52 = arith.constant 0 : index
    %c0_53 = arith.constant 0 : index
    %146 = vector.load %arg7[%c1_51, %c0_52, %c0_53] : memref<2x8x1xf32, #tpu.memory_space<vmem>>, vector<1x8x1xf32>
    %147 = vector.shape_cast %146 : vector<1x8x1xf32> to vector<8x1xf32>
    %148 = vector.broadcast %147 : vector<8x1xf32> to vector<8x256xf32>
    %149 = arith.addf %145, %148 : vector<8x256xf32>
    %150 = arith.addf %142, %149 : vector<8x256xf32>
    %cst_54 = arith.constant 0.000000e+00 : f32
    %151 = vector.broadcast %cst_54 : f32 to vector<8x256xf32>
    %152 = arith.maximumf %150, %151 : vector<8x256xf32>
    %c0_55 = arith.constant 0 : index
    %c0_56 = arith.constant 0 : index
    %153 = vector.load %arg8[%c0_55, %c0_56] : memref<8x72xf32, #tpu.memory_space<vmem>>, vector<8x72xf32>
    %c0_57 = arith.constant 0 : index
    %c0_58 = arith.constant 0 : index
    %154 = vector.load %arg9[%c0_57, %c0_58] : memref<8x1xf32, #tpu.memory_space<vmem>>, vector<8x1xf32>
    %cst_59 = arith.constant 0.000000e+00 : f32
    %155 = vector.broadcast %cst_59 : f32 to vector<8x128xf32>
    %156 = tpu.concatenate %155, %152, %155 in 1 : vector<8x128xf32>, vector<8x256xf32>, vector<8x128xf32> -> vector<8x512xf32>
    %157 = vector.broadcast %20 : vector<1x256xf32> to vector<8x256xf32>
    %158 = arith.mulf %152, %157 : vector<8x256xf32>
    %159 = tpu.concatenate %155, %158, %155 in 1 : vector<8x128xf32>, vector<8x256xf32>, vector<8x128xf32> -> vector<8x512xf32>
    %160 = vector.broadcast %24 : vector<1x256xf32> to vector<8x256xf32>
    %161 = arith.mulf %152, %160 : vector<8x256xf32>
    %162 = tpu.concatenate %155, %161, %155 in 1 : vector<8x128xf32>, vector<8x256xf32>, vector<8x128xf32> -> vector<8x512xf32>
    %163 = vector.extract_strided_slice %159 {offsets = [0, 111], sizes = [8, 256], strides = [1, 1]} : vector<8x512xf32> to vector<8x256xf32>
    %164 = vector.extract_strided_slice %156 {offsets = [0, 112], sizes = [8, 256], strides = [1, 1]} : vector<8x512xf32> to vector<8x256xf32>
    %165 = vector.extract_strided_slice %162 {offsets = [0, 113], sizes = [8, 256], strides = [1, 1]} : vector<8x512xf32> to vector<8x256xf32>
    %166 = vector.extract_strided_slice %159 {offsets = [0, 127], sizes = [8, 256], strides = [1, 1]} : vector<8x512xf32> to vector<8x256xf32>
    %167 = vector.extract_strided_slice %156 {offsets = [0, 128], sizes = [8, 256], strides = [1, 1]} : vector<8x512xf32> to vector<8x256xf32>
    %168 = vector.extract_strided_slice %162 {offsets = [0, 129], sizes = [8, 256], strides = [1, 1]} : vector<8x512xf32> to vector<8x256xf32>
    %169 = vector.extract_strided_slice %159 {offsets = [0, 143], sizes = [8, 256], strides = [1, 1]} : vector<8x512xf32> to vector<8x256xf32>
    %170 = vector.extract_strided_slice %156 {offsets = [0, 144], sizes = [8, 256], strides = [1, 1]} : vector<8x512xf32> to vector<8x256xf32>
    %171 = vector.extract_strided_slice %162 {offsets = [0, 145], sizes = [8, 256], strides = [1, 1]} : vector<8x512xf32> to vector<8x256xf32>
    %172 = tpu.concatenate %163, %164, %165, %166, %167, %168, %169, %170, %171 in 0 : vector<8x256xf32>, vector<8x256xf32>, vector<8x256xf32>, vector<8x256xf32>, vector<8x256xf32>, vector<8x256xf32>, vector<8x256xf32>, vector<8x256xf32>, vector<8x256xf32> -> vector<72x256xf32>
    %cst_60 = arith.constant dense<0.000000e+00> : vector<8x256xf32>
    %173 = tpu.matmul %153, %172, %cst_60 {dimension_numbers = #tpu.dot_dimension_numbers<[1], [0], [0], [1], [0, 0, 1, 1], [], []>} : vector<8x72xf32>, vector<72x256xf32>, vector<8x256xf32> -> vector<8x256xf32>
    %174 = vector.broadcast %154 : vector<8x1xf32> to vector<8x256xf32>
    %175 = arith.addf %173, %174 : vector<8x256xf32>
    %c0_61 = arith.constant 0 : index
    %c0_62 = arith.constant 0 : index
    %c0_63 = arith.constant 0 : index
    %176 = vector.load %arg13[%c0_61, %c0_62, %c0_63] : memref<1x8x256xf32, #tpu.memory_space<vmem>>, vector<1x8x256xf32>
    %177 = vector.shape_cast %176 : vector<1x8x256xf32> to vector<8x256xf32>
    %178 = vector.shape_cast %175 : vector<8x256xf32> to vector<1x8x256xf32>
    tpu.vector_store %arg13[%c0_61, %c0_62, %c0_63], %178 {strides = array<i32>} : memref<1x8x256xf32, #tpu.memory_space<vmem>>, vector<1x8x256xf32>,
    %cst_64 = arith.constant 0.000000e+00 : f32
    %179 = vector.broadcast %cst_64 : f32 to vector<8x256xf32>
    %180 = arith.subf %179, %175 : vector<8x256xf32>
    %181 = math.exp %180 : vector<8x256xf32>
    %cst_65 = arith.constant 1.000000e+00 : f32
    %182 = vector.broadcast %cst_65 : f32 to vector<8x256xf32>
    %183 = arith.addf %182, %181 : vector<8x256xf32>
    %cst_66 = arith.constant 1.000000e+00 : f32
    %184 = vector.broadcast %cst_66 : f32 to vector<8x256xf32>
    %185 = arith.divf %184, %183 : vector<8x256xf32>
    %cst_67 = arith.constant dense<0.000000e+00> : vector<8xf32>
    %186 = vector.multi_reduction <add>, %185, %cst_67 [1] : vector<8x256xf32> to vector<8xf32>
    %187 = vector.shape_cast %186 : vector<8xf32> to vector<8x1xf32>
    %cst_68 = arith.constant 9.99999997E-7 : f32
    %188 = vector.broadcast %cst_68 : f32 to vector<8x1xf32>
    %189 = arith.maximumf %187, %188 : vector<8x1xf32>
    %cst_69 = arith.constant dense<0.000000e+00> : vector<8x8xf32>
    %190 = tpu.matmul %185, %152, %cst_69 {dimension_numbers = #tpu.dot_dimension_numbers<[1], [1], [0], [0], [0, 0, 1, 0], [], []>} : vector<8x256xf32>, vector<8x256xf32>, vector<8x8xf32> -> vector<8x8xf32>
    %191 = vector.broadcast %189 : vector<8x1xf32> to vector<8x8xf32>
    %192 = arith.divf %190, %191 : vector<8x8xf32>
    %c0_70 = arith.constant 0 : index
    %c0_71 = arith.constant 0 : index
    %193 = vector.load %arg10[%c0_70, %c0_71] : memref<8x128xf32, #tpu.memory_space<vmem>>, vector<8x128xf32>
    %cst_72 = arith.constant dense<0.000000e+00> : vector<8x128xf32>
    %194 = tpu.matmul %192, %193, %cst_72 {dimension_numbers = #tpu.dot_dimension_numbers<[1], [0], [0], [1], [0, 0, 1, 1], [], []>} : vector<8x8xf32>, vector<8x128xf32>, vector<8x128xf32> -> vector<8x128xf32>
    %c0_73 = arith.constant 0 : index
    %c0_74 = arith.constant 0 : index
    %195 = vector.load %arg11[%c0_73, %c0_74] : memref<1x128xf32, #tpu.memory_space<vmem>>, vector<1x128xf32>
    %196 = vector.broadcast %195 : vector<1x128xf32> to vector<8x128xf32>
    %197 = arith.addf %194, %196 : vector<8x128xf32>
    %c0_75 = arith.constant 0 : index
    %c0_76 = arith.constant 0 : index
    %c0_77 = arith.constant 0 : index
    %198 = vector.load %arg12[%c0_75, %c0_76, %c0_77] : memref<1x8x128xf32, #tpu.memory_space<vmem>>, vector<1x8x128xf32>
    %199 = vector.shape_cast %198 : vector<1x8x128xf32> to vector<8x128xf32>
    %200 = vector.shape_cast %197 : vector<8x128xf32> to vector<1x8x128xf32>
    tpu.vector_store %arg12[%c0_75, %c0_76, %c0_77], %200 {strides = array<i32>} : memref<1x8x128xf32, #tpu.memory_space<vmem>>, vector<1x8x128xf32>,
    return
  }
  func.func @transform_0(%arg0: i32) -> (i32, i32, i32) {
    %c0_i32 = arith.constant 0 : i32
    %c0_i32_0 = arith.constant 0 : i32
    %c0_i32_1 = arith.constant 0 : i32
    return %arg0, %c0_i32, %c0_i32_0 : i32, i32, i32
  }
  func.func @transform_1(%arg0: i32) -> (i32, i32, i32) {
    %c0_i32 = arith.constant 0 : i32
    %c0_i32_0 = arith.constant 0 : i32
    %c0_i32_1 = arith.constant 0 : i32
    %c0_i32_2 = arith.constant 0 : i32
    return %c0_i32, %c0_i32_0, %c0_i32_1 : i32, i32, i32
  }
  func.func @transform_2(%arg0: i32) -> (i32, i32, i32) {
    %c0_i32 = arith.constant 0 : i32
    %c0_i32_0 = arith.constant 0 : i32
    %c0_i32_1 = arith.constant 0 : i32
    %c0_i32_2 = arith.constant 0 : i32
    return %c0_i32, %c0_i32_0, %c0_i32_1 : i32, i32, i32
  }
  func.func @transform_3(%arg0: i32) -> (i32, i32, i32) {
    %c0_i32 = arith.constant 0 : i32
    %c0_i32_0 = arith.constant 0 : i32
    %c0_i32_1 = arith.constant 0 : i32
    %c0_i32_2 = arith.constant 0 : i32
    return %c0_i32, %c0_i32_0, %c0_i32_1 : i32, i32, i32
  }
  func.func @transform_4(%arg0: i32) -> (i32, i32, i32) {
    %c0_i32 = arith.constant 0 : i32
    %c0_i32_0 = arith.constant 0 : i32
    %c0_i32_1 = arith.constant 0 : i32
    %c0_i32_2 = arith.constant 0 : i32
    return %c0_i32, %c0_i32_0, %c0_i32_1 : i32, i32, i32
  }
  func.func @transform_5(%arg0: i32) -> (i32, i32, i32) {
    %c0_i32 = arith.constant 0 : i32
    %c0_i32_0 = arith.constant 0 : i32
    %c0_i32_1 = arith.constant 0 : i32
    %c0_i32_2 = arith.constant 0 : i32
    return %c0_i32, %c0_i32_0, %c0_i32_1 : i32, i32, i32
  }
  func.func @transform_6(%arg0: i32) -> (i32, i32, i32) {
    %c0_i32 = arith.constant 0 : i32
    %c0_i32_0 = arith.constant 0 : i32
    %c0_i32_1 = arith.constant 0 : i32
    %c0_i32_2 = arith.constant 0 : i32
    return %c0_i32, %c0_i32_0, %c0_i32_1 : i32, i32, i32
  }
  func.func @transform_7(%arg0: i32) -> (i32, i32) {
    %c0_i32 = arith.constant 0 : i32
    %c0_i32_0 = arith.constant 0 : i32
    %c0_i32_1 = arith.constant 0 : i32
    return %c0_i32, %c0_i32_0 : i32, i32
  }
  func.func @transform_8(%arg0: i32) -> (i32, i32) {
    %c0_i32 = arith.constant 0 : i32
    %c0_i32_0 = arith.constant 0 : i32
    %c0_i32_1 = arith.constant 0 : i32
    return %c0_i32, %c0_i32_0 : i32, i32
  }
  func.func @transform_9(%arg0: i32) -> (i32, i32) {
    %c0_i32 = arith.constant 0 : i32
    %c0_i32_0 = arith.constant 0 : i32
    %c0_i32_1 = arith.constant 0 : i32
    return %c0_i32, %c0_i32_0 : i32, i32
  }
  func.func @transform_10(%arg0: i32) -> (i32, i32) {
    %c0_i32 = arith.constant 0 : i32
    %c0_i32_0 = arith.constant 0 : i32
    %c0_i32_1 = arith.constant 0 : i32
    return %c0_i32, %c0_i32_0 : i32, i32
  }
  func.func @transform_11(%arg0: i32) -> (i32, i32, i32) {
    %c0_i32 = arith.constant 0 : i32
    %c0_i32_0 = arith.constant 0 : i32
    %c0_i32_1 = arith.constant 0 : i32
    return %arg0, %c0_i32, %c0_i32_0 : i32, i32, i32
  }
  func.func @transform_12(%arg0: i32) -> (i32, i32, i32) {
    %c0_i32 = arith.constant 0 : i32
    %c0_i32_0 = arith.constant 0 : i32
    %c0_i32_1 = arith.constant 0 : i32
    return %arg0, %c0_i32, %c0_i32_0 : i32, i32, i32
  }
}

</mosaic_0001>

<bundles_post_ra>
// kernel: instance_branch_forward.1
= control target key start
LH: loop header
LB: loop body
LE: loop exit
PB: predicated region body
PF: predicated region fallthrough
CT: control target
= control target key end

     0   :  { %s2492_s21 = smov 0   ;;  %s3017_s0 = inlined_call_operand.vmem [shape: f32[2,4,256], index: 0, kind: input, shape index: {}]   ;;  %s3018_s1 = inlined_call_operand.vmem [shape: f32[2,8,72], index: 1, kind: input, shape index: {}]   ;;  %s3019_s2 = inlined_call_operand.vmem [shape: f32[2,8,1], index: 2, kind: input, shape index: {}]   ;;  %s3020_s3 = inlined_call_operand.vmem [shape: f32[2,8,72], index: 3, kind: input, shape index: {}]   ;;  %s3021_s4 = inlined_call_operand.vmem [shape: f32[2,8,1], index: 4, kind: input, shape index: {}]   ;;  %s3022_s5 = inlined_call_operand.vmem [shape: f32[2,8,8], index: 5, kind: input, shape index: {}]   ;;  %s3023_s6 = inlined_call_operand.vmem [shape: f32[2,8,1], index: 6, kind: input, shape index: {}]   ;;  %s3024_s7 = inlined_call_operand.vmem [shape: f32[8,72], index: 7, kind: input, shape index: {}]   ;;  %s3025_s8 = inlined_call_operand.vmem [shape: f32[8,1], index: 8, kind: input, shape index: {}]   ;;  %s3026_s9 = inlined_call_operand.vmem [shape: f32[8,128], index: 9, kind: input, shape index: {}]   ;;  %s3027_s10 = inlined_call_operand.vmem [shape: f32[1,128], index: 10, kind: input, shape index: {}]   ;;  %s3028_s11 = inlined_call_operand.vmem [shape: f32[2,8,128], index: 11, kind: output, shape index: {0}]   ;;  %s3029_s12 = inlined_call_operand.vmem [shape: f32[2,8,256], index: 12, kind: output, shape index: {1}]  }
   0x1 LB: > { %s1809_s22 = sadd.s32 4294967295, %s2414_s21   ;;  %p1813_p0 = scmp.ge.s32.totalorder %s2414_s21, 1  ;;  %s2414_s21 = sphi %s2492_s21, %s23_s21  }
   0x2   : > { %p365_p1 = scmp.lt.s32.totalorder %s2414_s21, 3 }
   0x4   : > { %p366_p2 = pnand %p1813_p0, %p365_p1 }
   0x5   : > { %s2417_s23 = smov (!%p366_p2), 95   ;;  %p411_p3 = scmp.lt.s32.totalorder (!%p366_p2), %s1809_s22, 1 }
   0x6   : > { %369 = sbr.rel (%p366_p2) target bundleno = 2387 (0x953), region = 64  ;;  %s2418_s24 = smov (!%p366_p2), 94  }
   0x7   : > { %s2419_s25 = smov (!%p366_p2), 96   ;;  %s2420_s30 = smov (!%p366_p2), 110  }
   0x8   : > { %s2421_s13 = smov (!%p366_p2), 111   ;;  %s2422_s14 = smov (!%p366_p2), 112  }
   0x9   : > { %s2423_s15 = smov (!%p366_p2), 127   ;;  %s2424_s16 = smov (!%p366_p2), 126  }
   0xa   : > { %s2425_s17 = smov (!%p366_p2), 17  }
   0xb   : > { %v425_v0 = vlaneseq  ;;  %v2416_v1 = vmov 0.0   ;;  %s3031_s22 = smov (!%p411_p3, %s1809_s22), 1  ;;  %vm471_vm2 = vcmask 1043456   ;;  %vm518_vm5 = vcmask 908288  }
   0xc   : > { %542 = vrot.lane.b32.xlu1 %v2416_v1, %s2417_s23  ;;  %551 = vrot.lane.b32.xlu0 %v2416_v1, %s2418_s24  ;;  %s1848_s26 = sshll.u32 %s3031_s22, 3  ;;  %vm544_vm6 = vcmask 777216   ;;  %vm553_vm7 = vcmask 769024   ;;  %vm535_vm8 = vcmask 785408   ;;  %vm526_vm9 = vcmask 900096  }
   0xd   : > { %v426_v2 = vand.u32 127, %v425_v0  ;;  %533 = vrot.lane.b32.xlu2 %v2416_v1, %s2419_s25  ;;  %s415_s29 = scalar_lea.vmem %s3017_s0, %s1848_s26  ;;  %vm511_vm10 = vcmask 916480   ;;  %vm489_vm11 = vcmask 1039360   ;;  %vm500_vm12 = vcmask 1031168  }
   0xe   : > { %v464_v4 = vld [vmem:[%s415_s29] sm:$0xff]  ;;  %vm615_vm13 = vcmask 138240   ;;  %vm652_vm14 = vcmask 588800   ;;  %vm900_vm15 = vcmask 64512   ;;  %s419_s29 = scalar_lea.vmem %s3028_s11, %s1848_s26 }
   0xf   : > { %v427_v3 = vadd.s32 128, %v426_v2  ;;  %v432_v5 = vand.u32 15, %v426_v2  ;;  %466 = vst [vmem:[#allocation1] ss:$2 sm:$0xff] %v464_v4 }
  0x11   : > { %v439_v6 = vand.u32 15, %v427_v3  ;;  %vm458_vm0 = vcmp.ge.s32.totalorder %v432_v5, 1  ;;  %vm452_vm4 = vcmp.le.s32.totalorder %v432_v5, 14 }
  0x12   : > { %v2512_v7 = vsel %vm458_vm0, 1.0, %v2416_v1  ;;  %v2529_v18 = vsel %vm452_vm4, 1.0, %v2416_v1 }
  0x13   : > { %vm459_vm1 = vcmp.ge.s32.totalorder %v439_v6, 1  ;;  %vm453_vm3 = vcmp.le.s32.totalorder %v439_v6, 14 }
  0x14   : > { %524 = vrot.lane.b32.xlu1 %v2416_v1, %s2420_s30  ;;  %v2514_v8 = vsel %vm459_vm1, 1.0, %v2416_v1  ;;  %v2527_v17 = vsel %vm453_vm3, 1.0, %v2416_v1 }
  0x16   : > { %v2516_v9 = vld.sshfl [vmem:[#allocation1] sm:$0xff pattern:$0x75316420]  ;;  %v2518_v10 = vld.sshfl [vmem:[#allocation1 + $0x8] sm:$0xff pattern:$0x75316420] }
  0x17   : > { %v472_v11 = vsel %vm471_vm2, %v2516_v9, 0.0  ;;  %v473_v12 = vsel %vm471_vm2, %v2518_v10, 0.0 }
  0x18   : > { %v1869_v13 = vpack.i.bf16 %v473_v12, %v472_v11  ;;  %v478_v14 = vmul.f32 %v2512_v7, %v472_v11  ;;  %v479_v15 = vmul.f32 %v2514_v8, %v473_v12  ;;  %v2534_v19 = vmul.f32 %v2527_v17, %v473_v12 }
  0x19   : > { %v476_v20 = vmul.f32 %v2529_v18, %v472_v11  ;;  %v1904_v22 = vpack.i.bf16 %v472_v11, %v2416_v1 }
  0x1a   : > { %v1879_v16 = vpack.i.bf16 %v479_v15, %v478_v14  ;;  %1875 = vrot.lane.b32.xlu2 %v1869_v13, %s2421_s13  ;;  %v1899_v23 = vpack.i.bf16 %v478_v14, %v2416_v1 }
  0x1b   : > { %v1884_v21 = vpack.i.bf16 %v2534_v19, %v476_v20  ;;  %v2542_v24 = vpack.i.bf16 %v476_v20, %v2416_v1 }
  0x1c   : > { %1870 = vrot.lane.b32.xlu1 %v1869_v13, %s2417_s23  ;;  %1880 = vrot.lane.b32.xlu0 %v1879_v16, %s2418_s24 }
  0x22   : > { %1885 = vrot.lane.b32.xlu2 %v1884_v21, %s2419_s25 }
  0x24   : > { %509 = vrot.lane.b32.xlu1 %v2534_v19, %s2422_s14  ;;  %1890 = vrot.lane.b32.xlu0 %v1879_v16, %s2420_s30 }
  0x2a   : > { %1900 = vrot.lane.b32.xlu2 %v1899_v23, %s2424_s16 }
  0x2c   : > { %1905 = vrot.lane.b32.xlu1 %v1904_v22, %s2423_s15  ;;  %1895 = vrot.lane.b32.xlu0 %v2542_v24, %s2422_s14 }
  0x32   : > { %487 = vrot.lane.b32.xlu2 %v473_v12, %s2423_s15 }
  0x34   : > { %498 = vrot.lane.b32.xlu0 %v479_v15, %s2424_s16 }
  0x67   : > { %v2550_v25 = vpop.permute.xlu2 %533 }
  0x74   : > { %v2552_v26 = vpop.permute.xlu2 %1875 }
  0x75   : > { %v1878_v27 = vunpack.i.h.bf16 %v2552_v26  ;;  %v1877_v28 = vunpack.i.l.bf16 %v2552_v26  ;;  %v475_v26 = vld [vmem:[%s3019_s2] sm:$0xff] }
  0x77   : > { %v519_v29 = vsel %vm518_vm5, %v1877_v28, %v1878_v27 }
  0x78   : > { %v1914_v30 = vpack.i.bf16 %v519_v29, %v1877_v28 }
  0x7a   : > { %1915 = vrot.lane.b32.xlu0 %v1914_v30, %s2425_s17 }
  0x7c   : > { %v1886_v43 = vpop.permute.xlu2 %1885 }
  0x7d   : > { %v1887_v45 = vunpack.i.l.bf16 %v1886_v43  ;;  %v1888_v47 = vunpack.i.h.bf16 %v1886_v43 }
  0x7e   : > { %v2559_v31 = vpop.permute.xlu1 %542  ;;  %v2564_v33 = vpop.permute.xlu0 %551 }
  0x7f   : > { %v536_v49 = vsel %vm535_vm8, %v1887_v45, %v1888_v47  ;;  %v537_v21 = vsel %vm535_vm8, %v1888_v47, %v2550_v25 }
  0x80   : > { %v1934_v53 = vpack.i.bf16 %v536_v49, %v1887_v45 }
  0x84   : > { %v1901_v57 = vpop.permute.xlu2 %1900 }
  0x85   : > { %v1903_v63 = vunpack.i.h.bf16 %v1901_v57  ;;  %v2580_v0 = vunpack.i.l.bf16 %v1901_v57 }
  0x86   : > { %v2562_v32 = vpop.permute.xlu1 %524 }
  0x87   : > { %v501_v5 = vsel %vm500_vm12, %v2580_v0, %v1903_v63 }
  0x8c   : > { %v488_v3 = vpop.permute.xlu2 %487 }
  0x8e   : > { %v1871_v34 = vpop.permute.xlu1 %1870  ;;  %v1881_v37 = vpop.permute.xlu0 %1880 }
  0x8f   : > { %v1873_v35 = vunpack.i.h.bf16 %v1871_v34  ;;  %v1872_v36 = vunpack.i.l.bf16 %v1871_v34  ;;  %v1883_v38 = vunpack.i.h.bf16 %v1881_v37  ;;  %v1882_v39 = vunpack.i.l.bf16 %v1881_v37 }
  0x91   : > { %v545_v40 = vsel %vm544_vm6, %v1872_v36, %v1873_v35  ;;  %v546_v41 = vsel %vm544_vm6, %v1873_v35, %v2559_v31  ;;  %v554_v44 = vsel %vm553_vm7, %v1882_v39, %v1883_v38  ;;  %v555_v16 = vsel %vm553_vm7, %v1883_v38, %v2564_v33 }
  0x92   : > { %v1909_v42 = vpack.i.bf16 %v546_v41, %v545_v40  ;;  %v1924_v46 = vpack.i.bf16 %v554_v44, %v1882_v39  ;;  %v1929_v20 = vpack.i.bf16 %v1872_v36, %v555_v16  ;;  %v2426_v40 = vmov 0  }
  0x93   : > { %1974 = vset.pattern.permute.xlu2 %v2426_v40  ;;  %2081 = vset.pattern.permute.xlu1 %v2426_v40 }
  0x94   : > { %1910 = vrot.lane.b32.xlu2 %v1909_v42, %s2425_s17  ;;  %1925 = vrot.lane.b32.xlu0 %v1924_v46, %s2425_s17 }
  0x95   : > { %2080 = vset.pattern.permute.xlu0 %v2426_v40 }
  0x96   : > { %v510_v48 = vpop.permute.xlu1 %509  ;;  %v1891_v50 = vpop.permute.xlu0 %1890 }
  0x97   : > { %v1893_v51 = vunpack.i.h.bf16 %v1891_v50  ;;  %v1892_v52 = vunpack.i.l.bf16 %v1891_v50 }
  0x99   : > { %v527_v54 = vsel %vm526_vm9, %v1892_v52, %v1893_v51  ;;  %v528_v55 = vsel %vm526_vm9, %v1893_v51, %v2562_v32  ;;  %v1939_v22 = vpack.i.bf16 %v1892_v52, %v537_v21 }
  0x9a   : > { %v1944_v56 = vpack.i.bf16 %v528_v55, %v527_v54 }
  0x9c   : > { %1945 = vrot.lane.b32.xlu2 %v1944_v56, %s2425_s17  ;;  %1935 = vrot.lane.b32.xlu0 %v1934_v53, %s2425_s17 }
  0x9e   : > { %v1906_v58 = vpop.permute.xlu1 %1905  ;;  %v1896_v59 = vpop.permute.xlu0 %1895 }
  0x9f   : > { %v1898_v60 = vunpack.i.h.bf16 %v1896_v59  ;;  %v1908_v61 = vunpack.i.h.bf16 %v1906_v58  ;;  %v2578_v62 = vunpack.i.l.bf16 %v1906_v58  ;;  %v2600_v23 = vunpack.i.l.bf16 %v1896_v59 }
  0xa1   : > { %v513_v1 = vsel %vm511_vm10, %v1898_v60, %v510_v48  ;;  %v490_v4 = vsel %vm489_vm11, %v2578_v62, %v1908_v61  ;;  %v491_v11 = vsel %vm489_vm11, %v1908_v61, %v488_v3  ;;  %v512_v28 = vsel %vm511_vm10, %v2600_v23, %v1898_v60 }
  0xa2   : > { %v1954_v2 = vpack.i.bf16 %v510_v48, %v513_v1  ;;  %v1959_v15 = vpack.i.bf16 %v488_v3, %v491_v11  ;;  %v1949_v29 = vpack.i.bf16 %v512_v28, %v1878_v27 }
  0xa4   : > { %1955 = vrot.lane.b32.xlu2 %v1954_v2, %s2425_s17 }
  0xa6   : > { %v499_v6 = vpop.permute.xlu0 %498 }
  0xa7   : > { %v1919_v12 = vpack.i.bf16 %v490_v4, %v499_v6  ;;  %v502_v13 = vsel %vm500_vm12, %v1903_v63, %v499_v6 }
  0xa8   : > { %v1964_v14 = vpack.i.bf16 %v502_v13, %v501_v5 }
  0xa9   : > { %1920 = vrot.lane.b32.xlu1 %v1919_v12, %s2425_s17 }
  0xaa   : > { %1965 = vrot.lane.b32.xlu0 %v1964_v14, %s2425_s17 }
  0xac   : > { %1960 = vrot.lane.b32.xlu2 %v1959_v15, %s2425_s17 }
  0xb1   : > { %1930 = vrot.lane.b32.xlu1 %v1929_v20, %s2425_s17 }
  0xb2   : > { %1970 = vrot.lane.b32.xlu0 %v2542_v24, %s2425_s17 }
  0xb4   : > { %558 = vperm.xlu2 %1974, %v475_v26  }
  0xb9   : > { %1940 = vrot.lane.b32.xlu1 %v1939_v22, %s2425_s17 }
  0xc1   : > { %1950 = vrot.lane.b32.xlu1 %v1949_v29, %s2425_s17 }
  0xc9   : > { %565 = vrot.lane.b32.xlu1 %v2534_v19, %s2425_s17 }
  0xec   : > { %v2610_v24 = vpop.permute.xlu0 %1915 }
  0xed   : > { %v1918_v52 = vunpack.i.h.bf16 %v2610_v24  ;;  %v1917_v53 = vunpack.i.l.bf16 %v2610_v24 }
  0xee   : > { %v1911_v37 = vpop.permute.xlu2 %1910 }
  0xef   : > { %v1913_v43 = vunpack.i.h.bf16 %v1911_v37  ;;  %v1912_v44 = vunpack.i.l.bf16 %v1911_v37  ;;  %v624_v63 = vsel %vm615_vm13, %v1917_v53, %v1918_v52 }
  0xf1   : > { %v631_v50 = vsel %vm615_vm13, %v1912_v44, %v1913_v43 }
  0xf6   : > { %v1946_v39 = vpop.permute.xlu2 %1945 }
  0xf7   : > { %v1948_v56 = vunpack.i.h.bf16 %v1946_v39  ;;  %v1947_v57 = vunpack.i.l.bf16 %v1946_v39  ;;  %v474_v39 = vld [vmem:[%s3018_s1] sm:$0xff] }
  0xf9   : > { %v627_v1 = vsel %vm615_vm13, %v1947_v57, %v1948_v56 }
  0xfe   : > { %v1956_v51 = vpop.permute.xlu2 %1955 }
  0xff   : > { %v1958_v2 = vunpack.i.h.bf16 %v1956_v51  ;;  %v1957_v3 = vunpack.i.l.bf16 %v1956_v51 }
 0x106   : > { %v1926_v30 = vpop.permute.xlu0 %1925  ;;  %v1961_v14 = vpop.permute.xlu2 %1960 }
 0x107   : > { %v1928_v34 = vunpack.i.h.bf16 %v1926_v30  ;;  %v1927_v35 = vunpack.i.l.bf16 %v1926_v30  ;;  %v1963_v29 = vunpack.i.h.bf16 %v1961_v14  ;;  %v1962_v24 = vunpack.i.l.bf16 %v1961_v14 }
 0x109   : > { %v632_v36 = vsel %vm615_vm13, %v1927_v35, %v1928_v34  ;;  %v619_v26 = vsel %vm615_vm13, %v1962_v24, %v1963_v29 }
 0x10a   : > { %663 = vmatpush.msra.mxu0 %v632_v36 }
 0x10e   : > { %v1936_v27 = vpop.permute.xlu0 %1935  ;;  %v559_v40 = vpop.permute.xlu2 %558 }
 0x10f   : > { %v1938_v19 = vunpack.i.h.bf16 %v1936_v27  ;;  %v1937_v41 = vunpack.i.l.bf16 %v1936_v27 }
 0x111   : > { %v628_v49 = vsel %vm615_vm13, %v1937_v41, %v1938_v19 }
 0x11b   : > { %v2613_v38 = vpop.permute.xlu1 %1920 }
 0x11c   : > { %v1966_v54 = vpop.permute.xlu0 %1965  ;;  %v1923_v15 = vunpack.i.h.bf16 %v2613_v38  ;;  %v1922_v16 = vunpack.i.l.bf16 %v2613_v38 }
 0x11d   : > { %v1968_v6 = vunpack.i.h.bf16 %v1966_v54  ;;  %v1967_v11 = vunpack.i.l.bf16 %v1966_v54 }
 0x11e   : > { %v618_v35 = vsel %vm615_vm13, %v1923_v15, %v1962_v24 }
 0x11f   : > { %v620_v30 = vsel %vm615_vm13, %v1967_v11, %v1968_v6  ;;  %v621_v36 = vsel %vm615_vm13, %v1968_v6, %v1922_v16 }
 0x123   : > { %v1931_v42 = vpop.permute.xlu1 %1930 }
 0x124   : > { %v1933_v45 = vunpack.i.h.bf16 %v1931_v42  ;;  %v1932_v46 = vunpack.i.l.bf16 %v1931_v42  ;;  %v1971_v5 = vpop.permute.xlu0 %1970 }
 0x125   : > { %v1973_v22 = vunpack.i.h.bf16 %v1971_v5  ;;  %v2632_v28 = vunpack.i.l.bf16 %v1971_v5 }
 0x126   : > { %v630_v47 = vsel %vm615_vm13, %v1933_v45, %v1912_v44  ;;  %v633_v48 = vsel %vm615_vm13, %v1928_v34, %v1932_v46  ;;  %v623_v34 = vsel %vm615_vm13, %v1957_v3, %v1958_v2 }
 0x127   : > { %664 = vmatpush.msra.mxu0 %v630_v47  ;;  %683 = vmatpush.msra.mxu1 %v633_v48  ;;  %v616_v37 = vsel %vm615_vm13, %v2632_v28, %v1973_v22 }
 0x129   : > { %684 = vmatpush.msra.mxu1 %v631_v50  ;;  %665 = vmatpush.msra.mxu0 %v628_v49 }
 0x12b   : > { %v1941_v55 = vpop.permute.xlu1 %1940 }
 0x12c   : > { %v1943_v58 = vunpack.i.h.bf16 %v1941_v55  ;;  %v1942_v59 = vunpack.i.l.bf16 %v1941_v55 }
 0x12e   : > { %v626_v60 = vsel %vm615_vm13, %v1943_v58, %v1947_v57  ;;  %v629_v61 = vsel %vm615_vm13, %v1938_v19, %v1942_v59 }
 0x12f   : > { %666 = vmatpush.msra.mxu0 %v626_v60  ;;  %685 = vmatpush.msra.mxu1 %v629_v61 }
 0x131   : > { %667 = vmatpush.msra.mxu0 %v624_v63  ;;  %686 = vmatpush.msra.mxu1 %v627_v1 }
 0x133   : > { %v1951_v4 = vpop.permute.xlu1 %1950 }
 0x134   : > { %v1953_v12 = vunpack.i.h.bf16 %v1951_v4  ;;  %v1952_v13 = vunpack.i.l.bf16 %v1951_v4 }
 0x136   : > { %v622_v20 = vsel %vm615_vm13, %v1953_v12, %v1957_v3  ;;  %v625_v21 = vsel %vm615_vm13, %v1918_v52, %v1952_v13 }
 0x137   : > { %668 = vmatpush.msra.mxu0 %v622_v20  ;;  %687 = vmatpush.msra.mxu1 %v625_v21 }
 0x139   : > { %669 = vmatpush.msra.mxu0 %v620_v30  ;;  %688 = vmatpush.msra.mxu1 %v623_v34 }
 0x13b   : > { %670 = vmatpush.msra.mxu0 %v618_v35  ;;  %689 = vmatpush.msra.mxu1 %v621_v36  ;;  %v566_v38 = vpop.permute.xlu1 %565 }
 0x13c   : > { %v617_v27 = vsel %vm615_vm13, %v1973_v22, %v566_v38 }
 0x13d   : > { %690 = vmatpush.msra.mxu1 %v619_v26  ;;  %671 = vmatpush.msra.mxu0 %v616_v37 }
 0x13e   : > { %1823 = vmatmul.msk.f32.vlgmr.msra.gmra.mxu0 %vm652_vm14, %v474_v39 }
 0x13f   : > { %691 = vmatpush.msra.mxu1 %v617_v27 }
 0x140   : > { %1824 = vmatmul.msk.f32.vlgmr.msra.gmra.mxu1 %vm652_vm14, %v474_v39 }
 0x141   : > { %1829 = vmatpush.msk.msrb.mxu1 %vm471_vm2, %v2518_v10 }
 0x1bb   : > { %v673_v19 = vpop.f32.mrf.mxu0 }
 0x1bc   : > { %v674_v41 = vadd.f32 %v673_v19, %v559_v40 }
 0x1bd   : > { %v693_v42 = vpop.f32.mrf.mxu1 }
 0x1be   : > { %v696_v43 = vmax.f32 %v674_v41, 0.0  ;;  %v694_v44 = vadd.f32 %v693_v42, %v559_v40 }
 0x1c0   : > { %v697_v45 = vmax.f32 %v694_v44, 0.0  ;;  %v702_v46 = vmul.f32 %v2512_v7, %v696_v43  ;;  %v700_v47 = vmul.f32 %v2529_v18, %v696_v43 }
 0x1c2   : > { %v1975_v48 = vpack.i.bf16 %v697_v45, %v696_v43  ;;  %v703_v49 = vmul.f32 %v2514_v8, %v697_v45  ;;  %v701_v50 = vmul.f32 %v2527_v17, %v697_v45 }
 0x1c4   : > { %1976 = vrot.lane.b32.xlu1 %v1975_v48, %s2417_s23  ;;  %v1985_v51 = vpack.i.bf16 %v703_v49, %v702_v46  ;;  %v1990_v10 = vpack.i.bf16 %v701_v50, %v700_v47 }
 0x1c6   : > { %1986 = vrot.lane.b32.xlu0 %v1985_v51, %s2418_s24  ;;  %1991 = vrot.lane.b32.xlu2 %v1990_v10, %s2419_s25 }
 0x1cc   : > { %1981 = vrot.lane.b32.xlu1 %v1975_v48, %s2421_s13 }
 0x1ce   : > { %1996 = vrot.lane.b32.xlu0 %v1985_v51, %s2420_s30  ;;  %2001 = vrot.lane.b32.xlu2 %v1990_v10, %s2422_s14 }
 0x1d4   : > { %2011 = vrot.lane.b32.xlu1 %v1975_v48, %s2423_s15 }
 0x1d6   : > { %2006 = vrot.lane.b32.xlu0 %v1985_v51, %s2424_s16 }
 0x220   : > { %v1992_v52 = vpop.permute.xlu2 %1991 }
 0x221   : > { %v1993_v34 = vunpack.i.l.bf16 %v1992_v52  ;;  %v1994_v27 = vunpack.i.h.bf16 %v1992_v52 }
 0x223   : > { %v743_v41 = vsel %vm535_vm8, %v1993_v34, %v1994_v27  ;;  %v744_v42 = vsel %vm535_vm8, %v1994_v27, %v2550_v25 }
 0x224   : > { %v2040_v44 = vpack.i.bf16 %v744_v42, %v743_v41 }
 0x228   : > { %v2002_v53 = vpop.permute.xlu2 %2001 }
 0x229   : > { %v2004_v55 = vunpack.i.h.bf16 %v2002_v53  ;;  %v2003_v45 = vunpack.i.l.bf16 %v2002_v53 }
 0x22b   : > { %v727_v48 = vsel %vm511_vm10, %v2003_v45, %v2004_v55  ;;  %v726_v51 = vsel %vm511_vm10, %v2600_v23, %v2003_v45 }
 0x236   : > { %v1977_v54 = vpop.permute.xlu1 %1976 }
 0x237   : > { %v1979_v56 = vunpack.i.h.bf16 %v1977_v54  ;;  %v1978_v57 = vunpack.i.l.bf16 %v1977_v54 }
 0x238   : > { %v1987_v58 = vpop.permute.xlu0 %1986 }
 0x239   : > { %v2025_v59 = vpack.i.bf16 %v1978_v57, %v2004_v55  ;;  %v749_v60 = vsel %vm544_vm6, %v1978_v57, %v1979_v56  ;;  %v1989_v61 = vunpack.i.h.bf16 %v1987_v58  ;;  %v1988_v63 = vunpack.i.l.bf16 %v1987_v58 }
 0x23a   : > { %v750_v1 = vsel %vm544_vm6, %v1979_v56, %v2559_v31 }
 0x23b   : > { %2026 = vrot.lane.b32.xlu2 %v2025_v59, %s2425_s17  ;;  %v2015_v2 = vpack.i.bf16 %v750_v1, %v749_v60  ;;  %v755_v4 = vsel %vm553_vm7, %v1988_v63, %v1989_v61  ;;  %v756_v5 = vsel %vm553_vm7, %v1989_v61, %v2564_v33  ;;  %v2055_v50 = vpack.i.bf16 %v727_v48, %v1988_v63  ;;  %v2703_v1 = vld [vmem:[%s3022_s5] sm:$0xff] }
 0x23c   : > { %v2035_v14 = vpack.i.bf16 %v756_v5, %v755_v4  ;;  %1830 = vmatmul.msk.f32.vlgmr.msrb.gmra.mxu1 %vm900_vm15, %v2703_v1 }
 0x23d   : > { %2016 = vrot.lane.b32.xlu0 %v2015_v2, %s2425_s17  ;;  %v699_v2 = vld [vmem:[%s3021_s4] sm:$0xff] }
 0x23e   : > { %v1982_v3 = vpop.permute.xlu1 %1981 }
 0x23f   : > { %v1984_v6 = vunpack.i.h.bf16 %v1982_v3  ;;  %v1983_v11 = vunpack.i.l.bf16 %v1982_v3  ;;  %v894_v3 = vld [vmem:[%s3023_s6] sm:$0xff] }
 0x240   : > { %v1997_v12 = vpop.permute.xlu0 %1996 }
 0x241   : > { %v732_v13 = vsel %vm518_vm5, %v1983_v11, %v1984_v6  ;;  %v1999_v16 = vunpack.i.h.bf16 %v1997_v12  ;;  %v1998_v20 = vunpack.i.l.bf16 %v1997_v12  ;;  %v2070_v52 = vpack.i.bf16 %v726_v51, %v1983_v11 }
 0x242   : > { %v2020_v15 = vpack.i.bf16 %v1984_v6, %v732_v13 }
 0x243   : > { %2036 = vrot.lane.b32.xlu2 %v2035_v14, %s2425_s17  ;;  %v737_v22 = vsel %vm526_vm9, %v1998_v20, %v1999_v16  ;;  %v738_v29 = vsel %vm526_vm9, %v1999_v16, %v2562_v32 }
 0x244   : > { %v2045_v38 = vpack.i.bf16 %v738_v29, %v737_v22 }
 0x245   : > { %2021 = vrot.lane.b32.xlu0 %v2020_v15, %s2425_s17 }
 0x246   : > { %v2012_v21 = vpop.permute.xlu1 %2011 }
 0x247   : > { %v2014_v24 = vunpack.i.h.bf16 %v2012_v21  ;;  %v2013_v30 = vunpack.i.l.bf16 %v2012_v21 }
 0x248   : > { %v2007_v35 = vpop.permute.xlu0 %2006 }
 0x249   : > { %v2009_v36 = vunpack.i.h.bf16 %v2007_v35  ;;  %v2008_v37 = vunpack.i.l.bf16 %v2007_v35  ;;  %v711_v39 = vsel %vm489_vm11, %v2013_v30, %v2014_v24  ;;  %v2050_v43 = vpack.i.bf16 %v1998_v20, %v2014_v24 }
 0x24a   : > { %v2030_v26 = vpack.i.bf16 %v711_v39, %v1993_v34  ;;  %v710_v47 = vsel %vm489_vm11, %v2578_v62, %v2013_v30 }
 0x24b   : > { %v719_v40 = vsel %vm500_vm12, %v2008_v37, %v2009_v36  ;;  %2046 = vrot.lane.b32.xlu2 %v2045_v38, %s2425_s17  ;;  %v718_v46 = vsel %vm500_vm12, %v2580_v0, %v2008_v37 }
 0x24c   : > { %v2060_v19 = vpack.i.bf16 %v2009_v36, %v719_v40  ;;  %2031 = vrot.lane.b32.xlu1 %v2030_v26, %s2425_s17  ;;  %v2075_v49 = vpack.i.bf16 %v710_v47, %v718_v46 }
 0x24e   : > { %2061 = vrot.lane.b32.xlu0 %v2060_v19, %s2425_s17 }
 0x253   : > { %2051 = vrot.lane.b32.xlu2 %v2050_v43, %s2425_s17 }
 0x254   : > { %2041 = vrot.lane.b32.xlu1 %v2040_v44, %s2425_s17 }
 0x256   : > { %2066 = vrot.lane.b32.xlu0 %v1990_v10, %s2425_s17 }
 0x25b   : > { %2076 = vrot.lane.b32.xlu2 %v2075_v49, %s2425_s17 }
 0x25c   : > { %2056 = vrot.lane.b32.xlu1 %v2055_v50, %s2425_s17  ;;  %v698_v50 = vld [vmem:[%s3020_s3] sm:$0xff] }
 0x25e   : > { %759 = vperm.xlu0 %2080, %v699_v2  }
 0x264   : > { %2071 = vrot.lane.b32.xlu1 %v2070_v52, %s2425_s17 }
 0x26c   : > { %897 = vperm.xlu1 %2081, %v894_v3  }
 0x295   : > { %v2027_v10 = vpop.permute.xlu2 %2026 }
 0x296   : > { %v2028_v29 = vunpack.i.l.bf16 %v2027_v10  ;;  %v2029_v38 = vunpack.i.h.bf16 %v2027_v10 }
 0x29d   : > { %v2037_v53 = vpop.permute.xlu2 %2036 }
 0x29e   : > { %v2039_v54 = vunpack.i.h.bf16 %v2037_v53  ;;  %v2038_v56 = vunpack.i.l.bf16 %v2037_v53 }
 0x2a0   : > { %v831_v57 = vsel %vm615_vm13, %v2038_v56, %v2039_v54 }
 0x2a1   : > { %880 = vmatpush.msra.mxu3 %v831_v57 }
 0x2a5   : > { %v2047_v4 = vpop.permute.xlu2 %2046 }
 0x2a6   : > { %v2049_v11 = vunpack.i.h.bf16 %v2047_v4  ;;  %v2048_v12 = vunpack.i.l.bf16 %v2047_v4 }
 0x2a8   : > { %v825_v21 = vsel %vm615_vm13, %v2048_v12, %v2049_v11 }
 0x2ad   : > { %v2052_v24 = vpop.permute.xlu2 %2051 }
 0x2ae   : > { %v2054_v19 = vunpack.i.h.bf16 %v2052_v24  ;;  %v2053_v41 = vunpack.i.l.bf16 %v2052_v24 }
 0x2af   : > { %v2017_v55 = vpop.permute.xlu0 %2016 }
 0x2b0   : > { %v2019_v58 = vunpack.i.h.bf16 %v2017_v55  ;;  %v2018_v59 = vunpack.i.l.bf16 %v2017_v55  ;;  %v824_v10 = vsel %vm615_vm13, %v2054_v19, %v2048_v12 }
 0x2b2   : > { %v829_v60 = vsel %vm615_vm13, %v2018_v59, %v2019_v58  ;;  %v828_v42 = vsel %vm615_vm13, %v2029_v38, %v2018_v59 }
 0x2b3   : > { %881 = vmatpush.msra.mxu3 %v829_v60 }
 0x2b5   : > { %v2077_v54 = vpop.permute.xlu2 %2076 }
 0x2b6   : > { %v2078_v57 = vunpack.i.l.bf16 %v2077_v54  ;;  %v2079_v58 = vunpack.i.h.bf16 %v2077_v54 }
 0x2b7   : > { %v2022_v61 = vpop.permute.xlu0 %2021 }
 0x2b8   : > { %v2024_v15 = vunpack.i.h.bf16 %v2022_v61  ;;  %v2023_v16 = vunpack.i.l.bf16 %v2022_v61 }
 0x2b9   : > { %v941_v2 = vpop.f32.mrf.mxu1 }
 0x2ba   : > { %v823_v22 = vsel %vm615_vm13, %v2023_v16, %v2024_v15 }
 0x2be   : > { %v2698_v63 = vpop.permute.xlu1 %2031 }
 0x2bf   : > { %v2034_v26 = vunpack.i.h.bf16 %v2698_v63  ;;  %v2033_v43 = vunpack.i.l.bf16 %v2698_v63 }
 0x2c0   : > { %v2062_v5 = vpop.permute.xlu0 %2061 }
 0x2c1   : > { %v2064_v34 = vunpack.i.h.bf16 %v2062_v5  ;;  %v2063_v35 = vunpack.i.l.bf16 %v2062_v5  ;;  %v817_v48 = vsel %vm615_vm13, %v2034_v26, %v2053_v41  ;;  %v816_v60 = vsel %vm615_vm13, %v2079_v58, %v2034_v26 }
 0x2c3   : > { %v819_v46 = vsel %vm615_vm13, %v2063_v35, %v2064_v34  ;;  %v818_v59 = vsel %vm615_vm13, %v2078_v57, %v2063_v35 }
 0x2c6   : > { %v2042_v6 = vpop.permute.xlu1 %2041 }
 0x2c7   : > { %v2044_v13 = vunpack.i.h.bf16 %v2042_v6  ;;  %v2043_v14 = vunpack.i.l.bf16 %v2042_v6 }
 0x2c8   : > { %v2067_v39 = vpop.permute.xlu0 %2066 }
 0x2c9   : > { %v827_v20 = vsel %vm615_vm13, %v2043_v14, %v2044_v13  ;;  %v2069_v44 = vunpack.i.h.bf16 %v2067_v39  ;;  %v2068_v45 = vunpack.i.l.bf16 %v2067_v39  ;;  %v826_v47 = vsel %vm615_vm13, %v2033_v43, %v2043_v14 }
 0x2ca   : > { %882 = vmatpush.msra.mxu3 %v827_v20 }
 0x2cb   : > { %v815_v53 = vsel %vm615_vm13, %v2068_v45, %v2069_v44  ;;  %v814_v61 = vsel %vm615_vm13, %v2632_v28, %v2068_v45 }
 0x2cc   : > { %883 = vmatpush.msra.mxu3 %v825_v21 }
 0x2ce   : > { %v2057_v30 = vpop.permute.xlu1 %2056  ;;  %884 = vmatpush.msra.mxu3 %v823_v22 }
 0x2cf   : > { %v2059_v36 = vunpack.i.h.bf16 %v2057_v30  ;;  %v2058_v37 = vunpack.i.l.bf16 %v2057_v30 }
 0x2d0   : > { %v760_v63 = vpop.permute.xlu0 %759 }
 0x2d1   : > { %v830_v27 = vsel %vm615_vm13, %v2058_v37, %v2038_v56  ;;  %v821_v40 = vsel %vm615_vm13, %v2059_v36, %v2028_v29 }
 0x2d2   : > { %860 = vmatpush.msra.mxu2 %v830_v27  ;;  %885 = vmatpush.msra.mxu3 %v821_v40 }
 0x2d4   : > { %861 = vmatpush.msra.mxu2 %v828_v42  ;;  %886 = vmatpush.msra.mxu3 %v819_v46 }
 0x2d6   : > { %v2072_v49 = vpop.permute.xlu1 %2071  ;;  %862 = vmatpush.msra.mxu2 %v826_v47  ;;  %887 = vmatpush.msra.mxu3 %v817_v48 }
 0x2d7   : > { %v2074_v51 = vunpack.i.h.bf16 %v2072_v49  ;;  %v2073_v52 = vunpack.i.l.bf16 %v2072_v49 }
 0x2d8   : > { %863 = vmatpush.msra.mxu2 %v824_v10  ;;  %888 = vmatpush.msra.mxu3 %v815_v53 }
 0x2d9   : > { %v822_v56 = vsel %vm615_vm13, %v2073_v52, %v2023_v16  ;;  %1826 = vmatmul.msk.f32.vlgmr.msra.gmra.mxu3 %vm652_vm14, %v698_v50  ;;  %v820_v55 = vsel %vm615_vm13, %v2074_v51, %v2059_v36 }
 0x2da   : > { %864 = vmatpush.msra.mxu2 %v822_v56  ;;  %1827 = vmatpush.msk.msrb.mxu3 %vm471_vm2, %v2516_v9 }
 0x2dc   : > { %865 = vmatpush.msra.mxu2 %v820_v55 }
 0x2de   : > { %866 = vmatpush.msra.mxu2 %v818_v59  ;;  %v898_v3 = vpop.permute.xlu1 %897 }
 0x2df   : > { %v942_v4 = vadd.f32 %v941_v2, %v898_v3 }
 0x2e0   : > { %867 = vmatpush.msra.mxu2 %v816_v60 }
 0x2e1   : > { %1828 = vmatmul.msk.f32.vlgmr.msrb.gmra.mxu3 %vm900_vm15, %v2703_v1 }
 0x2e2   : > { %868 = vmatpush.msra.mxu2 %v814_v61 }
 0x2e3   : > { %1825 = vmatmul.msk.f32.vlgmr.msra.gmra.mxu2 %vm652_vm14, %v698_v50 }
 0x35c   : > { %v890_v9 = vpop.f32.mrf.mxu3 }
 0x35d   : > { %v891_v5 = vadd.f32 %v890_v9, %v760_v63 }
 0x35f   : > { %v945_v11 = vadd.f32 %v942_v4, %v891_v5 }
 0x361   : > { %v2741_v15 = vmax.f32 %v945_v11, 0.0 }
 0x363   : > { %v955_v22 = vmul.f32 %v2514_v8, %v2741_v15  ;;  %v953_v24 = vmul.f32 %v2527_v17, %v2741_v15 }
 0x364   : > { %v921_v6 = vpop.f32.mrf.mxu3 }
 0x365   : > { %v922_v12 = vadd.f32 %v921_v6, %v898_v3 }
 0x366   : > { %v870_v13 = vpop.f32.mrf.mxu2 }
 0x367   : > { %v871_v14 = vadd.f32 %v870_v13, %v760_v63 }
 0x369   : > { %v944_v16 = vadd.f32 %v922_v12, %v871_v14 }
 0x36b   : > { %v2743_v20 = vmax.f32 %v944_v16, 0.0 }
 0x36d   : > { %v2082_v1 = vpack.i.bf16 %v2741_v15, %v2743_v20  ;;  %v954_v21 = vmul.f32 %v2512_v7, %v2743_v20  ;;  %v952_v29 = vmul.f32 %v2529_v18, %v2743_v20 }
 0x36f   : > { %2083 = vrot.lane.b32.xlu1 %v2082_v1, %s2417_s23  ;;  %v2102_v30 = vpack.i.bf16 %v955_v22, %v954_v21  ;;  %v2756_v34 = vpack.i.bf16 %v953_v24, %v952_v29 }
 0x371   : > { %2103 = vrot.lane.b32.xlu0 %v2102_v30, %s2420_s30  ;;  %2093 = vrot.lane.b32.xlu2 %v2102_v30, %s2418_s24 }
 0x377   : > { %2088 = vrot.lane.b32.xlu1 %v2082_v1, %s2421_s13 }
 0x379   : > { %2113 = vrot.lane.b32.xlu0 %v2102_v30, %s2424_s16  ;;  %2098 = vrot.lane.b32.xlu2 %v2756_v34, %s2419_s25 }
 0x37f   : > { %2118 = vrot.lane.b32.xlu1 %v2082_v1, %s2423_s15 }
 0x381   : > { %2108 = vrot.lane.b32.xlu2 %v2756_v34, %s2422_s14 }
 0x3cb   : > { %v2094_v35 = vpop.permute.xlu2 %2093 }
 0x3cc   : > { %v2096_v36 = vunpack.i.h.bf16 %v2094_v35  ;;  %v2095_v57 = vunpack.i.l.bf16 %v2094_v35 }
 0x3ce   : > { %v1008_v27 = vsel %vm553_vm7, %v2096_v36, %v2564_v33  ;;  %v1007_v60 = vsel %vm553_vm7, %v2095_v57, %v2096_v36  ;;  %v1832_v36 = vld [vmem:[%s3019_s2 + $0x8] sm:$0xff] }
 0x3cf   : > { %v2142_v3 = vpack.i.bf16 %v1007_v60, %v2095_v57 }
 0x3d3   : > { %v2099_v38 = vpop.permute.xlu2 %2098 }
 0x3d4   : > { %v2101_v44 = vunpack.i.h.bf16 %v2099_v38  ;;  %v2100_v5 = vunpack.i.l.bf16 %v2099_v38 }
 0x3d6   : > { %v996_v50 = vsel %vm535_vm8, %v2101_v44, %v2550_v25  ;;  %v995_v14 = vsel %vm535_vm8, %v2100_v5, %v2101_v44 }
 0x3d7   : > { %v2147_v22 = vpack.i.bf16 %v995_v14, %v2100_v5 }
 0x3db   : > { %v2109_v10 = vpop.permute.xlu2 %2108 }
 0x3dc   : > { %v2111_v58 = vunpack.i.h.bf16 %v2109_v10  ;;  %v2110_v59 = vunpack.i.l.bf16 %v2109_v10 }
 0x3de   : > { %v979_v9 = vsel %vm511_vm10, %v2110_v59, %v2111_v58  ;;  %v978_v63 = vsel %vm511_vm10, %v2600_v23, %v2110_v59 }
 0x3df   : > { %v2167_v6 = vpack.i.bf16 %v2111_v58, %v979_v9 }
 0x3e1   : > { %v2084_v37 = vpop.permute.xlu1 %2083 }
 0x3e2   : > { %v2086_v39 = vunpack.i.h.bf16 %v2084_v37  ;;  %v2085_v26 = vunpack.i.l.bf16 %v2084_v37 }
 0x3e3   : > { %v2104_v19 = vpop.permute.xlu0 %2103 }
 0x3e4   : > { %v2122_v40 = vpack.i.bf16 %v2085_v26, %v1008_v27  ;;  %v1001_v41 = vsel %vm544_vm6, %v2085_v26, %v2086_v39  ;;  %v1002_v42 = vsel %vm544_vm6, %v2086_v39, %v2559_v31  ;;  %v2106_v45 = vunpack.i.h.bf16 %v2104_v19 }
 0x3e5   : > { %v2127_v43 = vpack.i.bf16 %v1002_v42, %v1001_v41  ;;  %v2105_v46 = vunpack.i.l.bf16 %v2104_v19 }
 0x3e6   : > { %2123 = vrot.lane.b32.xlu0 %v2122_v40, %s2425_s17  ;;  %v990_v52 = vsel %vm526_vm9, %v2106_v45, %v2562_v32 }
 0x3e7   : > { %2128 = vrot.lane.b32.xlu1 %v2127_v43, %s2425_s17  ;;  %v989_v51 = vsel %vm526_vm9, %v2105_v46, %v2106_v45  ;;  %v2137_v53 = vpack.i.bf16 %v2105_v46, %v996_v50 }
 0x3e8   : > { %v2152_v55 = vpack.i.bf16 %v990_v52, %v989_v51 }
 0x3e9   : > { %v2089_v47 = vpop.permute.xlu1 %2088 }
 0x3ea   : > { %v2091_v48 = vunpack.i.h.bf16 %v2089_v47  ;;  %v2090_v49 = vunpack.i.l.bf16 %v2089_v47 }
 0x3eb   : > { %v2114_v11 = vpop.permute.xlu0 %2113 }
 0x3ec   : > { %v984_v54 = vsel %vm518_vm5, %v2090_v49, %v2091_v48  ;;  %v2157_v2 = vpack.i.bf16 %v978_v63, %v2091_v48  ;;  %v2116_v16 = vunpack.i.h.bf16 %v2114_v11  ;;  %v2115_v29 = vunpack.i.l.bf16 %v2114_v11 }
 0x3ed   : > { %v2132_v56 = vpack.i.bf16 %v984_v54, %v2090_v49 }
 0x3ee   : > { %2138 = vrot.lane.b32.xlu0 %v2137_v53, %s2425_s17  ;;  %v970_v30 = vsel %vm500_vm12, %v2580_v0, %v2115_v29  ;;  %v971_v35 = vsel %vm500_vm12, %v2115_v29, %v2116_v16 }
 0x3ef   : > { %2133 = vrot.lane.b32.xlu2 %v2132_v56, %s2425_s17  ;;  %2153 = vrot.lane.b32.xlu1 %v2152_v55, %s2425_s17  ;;  %v2177_v37 = vpack.i.bf16 %v971_v35, %v970_v30 }
 0x3f1   : > { %v2119_v61 = vpop.permute.xlu1 %2118 }
 0x3f2   : > { %v2120_v4 = vunpack.i.l.bf16 %v2119_v61  ;;  %v2121_v12 = vunpack.i.h.bf16 %v2119_v61 }
 0x3f4   : > { %v962_v13 = vsel %vm489_vm11, %v2578_v62, %v2120_v4  ;;  %v963_v1 = vsel %vm489_vm11, %v2120_v4, %v2121_v12 }
 0x3f5   : > { %v2162_v21 = vpack.i.bf16 %v962_v13, %v2116_v16  ;;  %v2172_v24 = vpack.i.bf16 %v2121_v12, %v963_v1 }
 0x3f6   : > { %2158 = vrot.lane.b32.xlu0 %v2157_v2, %s2425_s17 }
 0x3f7   : > { %2143 = vrot.lane.b32.xlu2 %v2142_v3, %s2425_s17  ;;  %2168 = vrot.lane.b32.xlu1 %v2167_v6, %s2425_s17 }
 0x3fe   : > { %2163 = vrot.lane.b32.xlu0 %v2162_v21, %s2425_s17 }
 0x3ff   : > { %2148 = vrot.lane.b32.xlu2 %v2147_v22, %s2425_s17  ;;  %2173 = vrot.lane.b32.xlu1 %v2172_v24, %s2425_s17 }
 0x406   : > { %1011 = vperm.xlu0 %2080, %v1832_v36  }
 0x407   : > { %2178 = vrot.lane.b32.xlu2 %v2177_v37, %s2425_s17 }
 0x40f   : > { %2183 = vrot.lane.b32.xlu2 %v2756_v34, %s2425_s17 }
 0x449   : > { %v2134_v38 = vpop.permute.xlu2 %2133 }
 0x44a   : > { %v2136_v54 = vunpack.i.h.bf16 %v2134_v38  ;;  %v2135_v57 = vunpack.i.l.bf16 %v2134_v38 }
 0x44c   : > { %v1074_v63 = vsel %vm615_vm13, %v2135_v57, %v2136_v54 }
 0x451   : > { %v2144_v39 = vpop.permute.xlu2 %2143 }
 0x452   : > { %v2146_v26 = vunpack.i.h.bf16 %v2144_v39  ;;  %v2145_v27 = vunpack.i.l.bf16 %v2144_v39 }
 0x454   : > { %v1082_v40 = vsel %vm615_vm13, %v2145_v27, %v2146_v26 }
 0x455   : > { %1112 = vmatpush.msrb.mxu2 %v1082_v40 }
 0x458   : > { %v2124_v19 = vpop.permute.xlu0 %2123 }
 0x459   : > { %v2126_v41 = vunpack.i.h.bf16 %v2124_v19  ;;  %v2125_v42 = vunpack.i.l.bf16 %v2124_v19  ;;  %v2149_v43 = vpop.permute.xlu2 %2148  ;;  %v2129_v44 = vpop.permute.xlu1 %2128  ;;  %v1831_v19 = vld [vmem:[%s3018_s1 + $0x8] sm:$0xff] }
 0x45a   : > { %v2151_v45 = vunpack.i.h.bf16 %v2149_v43  ;;  %v2131_v46 = vunpack.i.h.bf16 %v2129_v44  ;;  %v2130_v47 = vunpack.i.l.bf16 %v2129_v44  ;;  %v2150_v48 = vunpack.i.l.bf16 %v2149_v43 }
 0x45b   : > { %v1083_v49 = vsel %vm615_vm13, %v2146_v26, %v2125_v42 }
 0x45c   : > { %1132 = vmatpush.msra.mxu3 %v1083_v49  ;;  %v1080_v34 = vsel %vm615_vm13, %v2126_v41, %v2130_v47  ;;  %v1081_v50 = vsel %vm615_vm13, %v2130_v47, %v2131_v46  ;;  %v1078_v51 = vsel %vm615_vm13, %v2150_v48, %v2151_v45 }
 0x45d   : > { %1113 = vmatpush.msrb.mxu2 %v1080_v34 }
 0x45e   : > { %1133 = vmatpush.msra.mxu3 %v1081_v50 }
 0x45f   : > { %1114 = vmatpush.msrb.mxu2 %v1078_v51 }
 0x460   : > { %v2139_v52 = vpop.permute.xlu0 %2138 }
 0x461   : > { %v2141_v10 = vunpack.i.h.bf16 %v2139_v52  ;;  %v2140_v53 = vunpack.i.l.bf16 %v2139_v52  ;;  %v2154_v56 = vpop.permute.xlu1 %2153  ;;  %v2179_v60 = vpop.permute.xlu2 %2178 }
 0x462   : > { %v2156_v55 = vunpack.i.h.bf16 %v2154_v56  ;;  %v2155_v58 = vunpack.i.l.bf16 %v2154_v56  ;;  %v2181_v5 = vunpack.i.h.bf16 %v2179_v60  ;;  %v2180_v11 = vunpack.i.l.bf16 %v2179_v60 }
 0x463   : > { %v1079_v59 = vsel %vm615_vm13, %v2151_v45, %v2140_v53  ;;  %v1839_v53 = vld [vmem:[%s3022_s5 + $0x8] sm:$0xff] }
 0x464   : > { %1134 = vmatpush.msra.mxu3 %v1079_v59  ;;  %v1076_v61 = vsel %vm615_vm13, %v2141_v10, %v2155_v58  ;;  %v1077_v9 = vsel %vm615_vm13, %v2155_v58, %v2156_v55  ;;  %v1070_v22 = vsel %vm615_vm13, %v2180_v11, %v2181_v5 }
 0x465   : > { %1115 = vmatpush.msrb.mxu2 %v1076_v61 }
 0x466   : > { %1135 = vmatpush.msra.mxu3 %v1077_v9 }
 0x467   : > { %1116 = vmatpush.msrb.mxu2 %v1074_v63 }
 0x468   : > { %v2159_v2 = vpop.permute.xlu0 %2158 }
 0x469   : > { %v2161_v3 = vunpack.i.h.bf16 %v2159_v2  ;;  %v2160_v4 = vunpack.i.l.bf16 %v2159_v2  ;;  %v2169_v6 = vpop.permute.xlu1 %2168  ;;  %v2184_v21 = vpop.permute.xlu2 %2183 }
 0x46a   : > { %v2171_v12 = vunpack.i.h.bf16 %v2169_v6  ;;  %v2170_v13 = vunpack.i.l.bf16 %v2169_v6  ;;  %v2186_v35 = vunpack.i.h.bf16 %v2184_v21  ;;  %v2185_v37 = vunpack.i.l.bf16 %v2184_v21 }
 0x46b   : > { %v1075_v14 = vsel %vm615_vm13, %v2136_v54, %v2160_v4 }
 0x46c   : > { %1136 = vmatpush.msra.mxu3 %v1075_v14  ;;  %v1072_v16 = vsel %vm615_vm13, %v2161_v3, %v2170_v13  ;;  %v1073_v1 = vsel %vm615_vm13, %v2170_v13, %v2171_v12  ;;  %v1066_v41 = vsel %vm615_vm13, %v2632_v28, %v2185_v37  ;;  %v1067_v42 = vsel %vm615_vm13, %v2185_v37, %v2186_v35 }
 0x46d   : > { %1117 = vmatpush.msrb.mxu2 %v1072_v16 }
 0x46e   : > { %1137 = vmatpush.msra.mxu3 %v1073_v1 }
 0x46f   : > { %1118 = vmatpush.msrb.mxu2 %v1070_v22 }
 0x470   : > { %v2164_v29 = vpop.permute.xlu0 %2163 }
 0x471   : > { %v2166_v24 = vunpack.i.h.bf16 %v2164_v29  ;;  %v2165_v30 = vunpack.i.l.bf16 %v2164_v29  ;;  %v2174_v36 = vpop.permute.xlu1 %2173 }
 0x472   : > { %v2176_v38 = vunpack.i.h.bf16 %v2174_v36  ;;  %v2175_v39 = vunpack.i.l.bf16 %v2174_v36 }
 0x473   : > { %v1071_v26 = vsel %vm615_vm13, %v2181_v5, %v2165_v30 }
 0x474   : > { %1138 = vmatpush.msra.mxu3 %v1071_v26  ;;  %v1068_v27 = vsel %vm615_vm13, %v2166_v24, %v2175_v39  ;;  %v1069_v40 = vsel %vm615_vm13, %v2175_v39, %v2176_v38 }
 0x475   : > { %1119 = vmatpush.msrb.mxu2 %v1068_v27 }
 0x476   : > { %1139 = vmatpush.msra.mxu3 %v1069_v40 }
 0x477   : > { %1120 = vmatpush.msrb.mxu2 %v1066_v41 }
 0x478   : > { %1140 = vmatpush.msra.mxu3 %v1067_v42  ;;  %1833 = vmatmul.msk.f32.vlgmr.msrb.gmra.mxu2 %vm652_vm14, %v1831_v19  ;;  %v1012_v43 = vpop.permute.xlu0 %1011 }
 0x479   : > { %1834 = vmatmul.msk.f32.vlgmr.msra.gmra.mxu3 %vm652_vm14, %v1831_v19  ;;  %1371 = vmatpush.msra.mxu2 %v2743_v20 }
 0x47a   : > { %1391 = vmatpush.msrb.mxu3 %v2741_v15 }
 0x480   : > { %1841 = vmatmul.msk.f32.vlgmr.msra.gmra.mxu2 %vm900_vm15, %v1839_v53 }
 0x481   : > { %1842 = vmatmul.msk.f32.vlgmr.msrb.gmra.mxu3 %vm900_vm15, %v1839_v53 }
 0x4fb   : > { %v1122_v44 = vpop.f32.mrf.mxu2 }
 0x4fc   : > { %v1142_v45 = vpop.f32.mrf.mxu3  ;;  %v1123_v46 = vadd.f32 %v1122_v44, %v1012_v43 }
 0x4fd   : > { %v1143_v47 = vadd.f32 %v1142_v45, %v1012_v43 }
 0x4fe   : > { %v1145_v48 = vmax.f32 %v1123_v46, 0.0 }
 0x4ff   : > { %v1146_v49 = vmax.f32 %v1143_v47, 0.0 }
 0x500   : > { %v1153_v50 = vmul.f32 %v2512_v7, %v1145_v48  ;;  %v1151_v52 = vmul.f32 %v2529_v18, %v1145_v48 }
 0x501   : > { %v2187_v34 = vpack.i.bf16 %v1146_v49, %v1145_v48  ;;  %v1154_v51 = vmul.f32 %v2514_v8, %v1146_v49  ;;  %v1152_v10 = vmul.f32 %v2527_v17, %v1146_v49 }
 0x503   : > { %2188 = vrot.lane.b32.xlu2 %v2187_v34, %s2417_s23  ;;  %v2197_v20 = vpack.i.bf16 %v1154_v51, %v1153_v50  ;;  %v2837_v15 = vpack.i.bf16 %v1152_v10, %v1151_v52 }
 0x505   : > { %2198 = vrot.lane.b32.xlu1 %v2197_v20, %s2418_s24  ;;  %2203 = vrot.lane.b32.xlu0 %v2837_v15, %s2419_s25 }
 0x50b   : > { %2193 = vrot.lane.b32.xlu2 %v2187_v34, %s2421_s13 }
 0x50d   : > { %2208 = vrot.lane.b32.xlu1 %v2197_v20, %s2420_s30  ;;  %2213 = vrot.lane.b32.xlu0 %v2837_v15, %s2422_s14 }
 0x513   : > { %2223 = vrot.lane.b32.xlu2 %v2187_v34, %s2423_s15 }
 0x515   : > { %2218 = vrot.lane.b32.xlu1 %v2197_v20, %s2424_s16 }
 0x55d   : > { %v2189_v54 = vpop.permute.xlu2 %2188 }
 0x55e   : > { %v2191_v56 = vunpack.i.h.bf16 %v2189_v54  ;;  %v2190_v57 = vunpack.i.l.bf16 %v2189_v54  ;;  %v1840_v54 = vld [vmem:[%s3023_s6 + $0x8] sm:$0xff] }
 0x560   : > { %v1200_v55 = vsel %vm544_vm6, %v2190_v57, %v2191_v56  ;;  %v1201_v58 = vsel %vm544_vm6, %v2191_v56, %v2559_v31  ;;  %v1836_v56 = vld [vmem:[%s3021_s4 + $0x8] sm:$0xff] }
 0x561   : > { %v2227_v59 = vpack.i.bf16 %v1201_v58, %v1200_v55 }
 0x563   : > { %2228 = vrot.lane.b32.xlu2 %v2227_v59, %s2425_s17 }
 0x565   : > { %v2194_v60 = vpop.permute.xlu2 %2193 }
 0x566   : > { %v2196_v61 = vunpack.i.h.bf16 %v2194_v60  ;;  %v2195_v9 = vunpack.i.l.bf16 %v2194_v60 }
 0x568   : > { %v1183_v63 = vsel %vm518_vm5, %v2195_v9, %v2196_v61 }
 0x569   : > { %v2232_v2 = vpack.i.bf16 %v1183_v63, %v2195_v9 }
 0x56b   : > { %2233 = vrot.lane.b32.xlu0 %v2232_v2, %s2425_s17 }
 0x56d   : > { %v2224_v45 = vpop.permute.xlu2 %2223 }
 0x56e   : > { %v2226_v50 = vunpack.i.h.bf16 %v2224_v45  ;;  %v2225_v51 = vunpack.i.l.bf16 %v2224_v45 }
 0x570   : > { %v1162_v52 = vsel %vm489_vm11, %v2225_v51, %v2226_v50  ;;  %v1161_v10 = vsel %vm489_vm11, %v2578_v62, %v2225_v51 }
 0x571   : > { %v2277_v20 = vpack.i.bf16 %v2226_v50, %v1162_v52 }
 0x577   : > { %v2199_v3 = vpop.permute.xlu1 %2198  ;;  %v2204_v6 = vpop.permute.xlu0 %2203 }
 0x578   : > { %v2201_v4 = vunpack.i.h.bf16 %v2199_v3  ;;  %v2200_v5 = vunpack.i.l.bf16 %v2199_v3  ;;  %v2206_v16 = vunpack.i.h.bf16 %v2204_v6  ;;  %v2205_v1 = vunpack.i.l.bf16 %v2204_v6 }
 0x57a   : > { %v1206_v11 = vsel %vm553_vm7, %v2200_v5, %v2201_v4  ;;  %v1207_v12 = vsel %vm553_vm7, %v2201_v4, %v2564_v33  ;;  %v1194_v24 = vsel %vm535_vm8, %v2205_v1, %v2206_v16  ;;  %v1195_v30 = vsel %vm535_vm8, %v2206_v16, %v2550_v25 }
 0x57b   : > { %v2237_v13 = vpack.i.bf16 %v1206_v11, %v2200_v5  ;;  %v2242_v14 = vpack.i.bf16 %v2190_v57, %v1207_v12  ;;  %v2247_v26 = vpack.i.bf16 %v1194_v24, %v2205_v1 }
 0x57d   : > { %2243 = vrot.lane.b32.xlu1 %v2242_v14, %s2425_s17  ;;  %2238 = vrot.lane.b32.xlu0 %v2237_v13, %s2425_s17 }
 0x57f   : > { %v2209_v21 = vpop.permute.xlu1 %2208  ;;  %v2214_v35 = vpop.permute.xlu0 %2213 }
 0x580   : > { %v2211_v22 = vunpack.i.h.bf16 %v2209_v21  ;;  %v2210_v29 = vunpack.i.l.bf16 %v2209_v21  ;;  %v2216_v27 = vunpack.i.h.bf16 %v2214_v35  ;;  %v2215_v40 = vunpack.i.l.bf16 %v2214_v35 }
 0x582   : > { %v2252_v36 = vpack.i.bf16 %v2210_v29, %v1195_v30  ;;  %v1188_v37 = vsel %vm526_vm9, %v2210_v29, %v2211_v22  ;;  %v1189_v38 = vsel %vm526_vm9, %v2211_v22, %v2562_v32  ;;  %v1178_v41 = vsel %vm511_vm10, %v2215_v40, %v2216_v27 }
 0x583   : > { %v2257_v39 = vpack.i.bf16 %v1189_v38, %v1188_v37  ;;  %v1177_v44 = vsel %vm511_vm10, %v2600_v23, %v2215_v40  ;;  %v2272_v48 = vpack.i.bf16 %v2216_v27, %v1178_v41 }
 0x584   : > { %v2262_v49 = vpack.i.bf16 %v1177_v44, %v2196_v61 }
 0x585   : > { %2258 = vrot.lane.b32.xlu2 %v2257_v39, %s2425_s17  ;;  %2253 = vrot.lane.b32.xlu1 %v2252_v36, %s2425_s17 }
 0x586   : > { %2248 = vrot.lane.b32.xlu0 %v2247_v26, %s2425_s17 }
 0x587   : > { %v2219_v19 = vpop.permute.xlu1 %2218 }
 0x588   : > { %v2221_v42 = vunpack.i.h.bf16 %v2219_v19  ;;  %v2220_v43 = vunpack.i.l.bf16 %v2219_v19 }
 0x58a   : > { %v1169_v46 = vsel %vm500_vm12, %v2580_v0, %v2220_v43  ;;  %v1170_v47 = vsel %vm500_vm12, %v2220_v43, %v2221_v42  ;;  %v2267_v53 = vpack.i.bf16 %v1161_v10, %v2221_v42 }
 0x58b   : > { %v2282_v34 = vpack.i.bf16 %v1170_v47, %v1169_v46 }
 0x58d   : > { %2273 = vrot.lane.b32.xlu2 %v2272_v48, %s2425_s17  ;;  %2263 = vrot.lane.b32.xlu1 %v2262_v49, %s2425_s17 }
 0x58e   : > { %2283 = vrot.lane.b32.xlu0 %v2282_v34, %s2425_s17 }
 0x595   : > { %2278 = vrot.lane.b32.xlu2 %v2277_v20, %s2425_s17  ;;  %2268 = vrot.lane.b32.xlu1 %v2267_v53, %s2425_s17 }
 0x596   : > { %2288 = vrot.lane.b32.xlu0 %v2837_v15, %s2425_s17 }
 0x59d   : > { %1350 = vperm.xlu2 %1974, %v1840_v54   ;;  %1210 = vperm.xlu1 %2081, %v1836_v56  }
 0x5bd   : > { %v2229_v55 = vpop.permute.xlu2 %2228 }
 0x5be   : > { %v2231_v58 = vunpack.i.h.bf16 %v2229_v55  ;;  %v2230_v59 = vunpack.i.l.bf16 %v2229_v55 }
 0x5c0   : > { %v1280_v11 = vsel %vm615_vm13, %v2230_v59, %v2231_v58  ;;  %v1835_v58 = vld [vmem:[%s3020_s3 + $0x8] sm:$0xff] }
 0x5dd   : > { %v2234_v57 = vpop.permute.xlu0 %2233 }
 0x5de   : > { %v2236_v24 = vunpack.i.h.bf16 %v2234_v57  ;;  %v2235_v30 = vunpack.i.l.bf16 %v2234_v57 }
 0x5df   : > { %v2259_v3 = vpop.permute.xlu2 %2258 }
 0x5e0   : > { %v2261_v13 = vunpack.i.h.bf16 %v2259_v3  ;;  %v2260_v1 = vunpack.i.l.bf16 %v2259_v3  ;;  %v1273_v27 = vsel %vm615_vm13, %v2235_v30, %v2236_v24 }
 0x5e2   : > { %v1276_v39 = vsel %vm615_vm13, %v2260_v1, %v2261_v13 }
 0x5e7   : > { %v2274_v35 = vpop.permute.xlu2 %2273 }
 0x5e8   : > { %v2276_v40 = vunpack.i.h.bf16 %v2274_v35  ;;  %v2275_v19 = vunpack.i.l.bf16 %v2274_v35 }
 0x5ea   : > { %v1272_v49 = vsel %vm615_vm13, %v2275_v19, %v2276_v40 }
 0x5ef   : > { %v2244_v60 = vpop.permute.xlu1 %2243  ;;  %v2239_v61 = vpop.permute.xlu0 %2238 }
 0x5f0   : > { %v2246_v9 = vunpack.i.h.bf16 %v2244_v60  ;;  %v2245_v63 = vunpack.i.l.bf16 %v2244_v60  ;;  %v2241_v2 = vunpack.i.h.bf16 %v2239_v61  ;;  %v2240_v15 = vunpack.i.l.bf16 %v2239_v61  ;;  %v2279_v34 = vpop.permute.xlu2 %2278 }
 0x5f1   : > { %v2281_v51 = vunpack.i.h.bf16 %v2279_v34  ;;  %v2280_v52 = vunpack.i.l.bf16 %v2279_v34 }
 0x5f2   : > { %v1281_v4 = vsel %vm615_vm13, %v2240_v15, %v2241_v2  ;;  %v1282_v5 = vsel %vm615_vm13, %v2241_v2, %v2245_v63  ;;  %v1279_v6 = vsel %vm615_vm13, %v2246_v9, %v2230_v59  ;;  %v1373_v9 = vpop.f32.mrf.mxu2  ;;  %v1393_v2 = vpop.f32.mrf.mxu3 }
 0x5f3   : > { %1311 = vmatpush.msrb.mxu0 %v1281_v4  ;;  %1331 = vmatpush.msra.mxu1 %v1282_v5  ;;  %v1268_v60 = vsel %vm615_vm13, %v2280_v52, %v2281_v51 }
 0x5f5   : > { %1312 = vmatpush.msrb.mxu0 %v1279_v6  ;;  %1332 = vmatpush.msra.mxu1 %v1280_v11 }
 0x5f7   : > { %v2254_v12 = vpop.permute.xlu1 %2253 }
 0x5f8   : > { %v2255_v14 = vunpack.i.l.bf16 %v2254_v12  ;;  %v2249_v16 = vpop.permute.xlu0 %2248  ;;  %v2256_v21 = vunpack.i.h.bf16 %v2254_v12  ;;  %v1351_v63 = vpop.permute.xlu2 %1350 }
 0x5f9   : > { %v2251_v22 = vunpack.i.h.bf16 %v2249_v16  ;;  %v2250_v29 = vunpack.i.l.bf16 %v2249_v16  ;;  %v1374_v4 = vadd.f32 %v1373_v9, %v1351_v63  ;;  %v1394_v11 = vadd.f32 %v1393_v2, %v1351_v63 }
 0x5fa   : > { %v1275_v38 = vsel %vm615_vm13, %v2256_v21, %v2260_v1 }
 0x5fb   : > { %v1277_v36 = vsel %vm615_vm13, %v2250_v29, %v2251_v22  ;;  %v1278_v37 = vsel %vm615_vm13, %v2251_v22, %v2255_v14 }
 0x5fc   : > { %1313 = vmatpush.msrb.mxu0 %v1277_v36  ;;  %1333 = vmatpush.msra.mxu1 %v1278_v37 }
 0x5fe   : > { %1314 = vmatpush.msrb.mxu0 %v1275_v38  ;;  %1334 = vmatpush.msra.mxu1 %v1276_v39 }
 0x5ff   : > { %v2264_v26 = vpop.permute.xlu1 %2263 }
 0x600   : > { %v2266_v41 = vunpack.i.h.bf16 %v2264_v26  ;;  %v2265_v42 = vunpack.i.l.bf16 %v2264_v26  ;;  %v2284_v43 = vpop.permute.xlu0 %2283  ;;  %1315 = vmatpush.msrb.mxu0 %v1273_v27 }
 0x601   : > { %v2286_v44 = vunpack.i.h.bf16 %v2284_v43  ;;  %v2285_v45 = vunpack.i.l.bf16 %v2284_v43 }
 0x602   : > { %v1271_v46 = vsel %vm615_vm13, %v2266_v41, %v2275_v19  ;;  %v1274_v47 = vsel %vm615_vm13, %v2236_v24, %v2265_v42 }
 0x603   : > { %1316 = vmatpush.msrb.mxu0 %v1271_v46  ;;  %1335 = vmatpush.msra.mxu1 %v1274_v47  ;;  %v1269_v48 = vsel %vm615_vm13, %v2285_v45, %v2286_v44 }
 0x605   : > { %1317 = vmatpush.msrb.mxu0 %v1269_v48  ;;  %1336 = vmatpush.msra.mxu1 %v1272_v49 }
 0x607   : > { %v2269_v50 = vpop.permute.xlu1 %2268 }
 0x608   : > { %v2271_v10 = vunpack.i.h.bf16 %v2269_v50  ;;  %v2270_v20 = vunpack.i.l.bf16 %v2269_v50  ;;  %v2289_v53 = vpop.permute.xlu0 %2288 }
 0x609   : > { %v2290_v54 = vunpack.i.l.bf16 %v2289_v53  ;;  %v2291_v56 = vunpack.i.h.bf16 %v2289_v53 }
 0x60a   : > { %v1267_v57 = vsel %vm615_vm13, %v2271_v10, %v2280_v52  ;;  %v1270_v55 = vsel %vm615_vm13, %v2286_v44, %v2270_v20 }
 0x60b   : > { %1318 = vmatpush.msrb.mxu0 %v1267_v57  ;;  %1337 = vmatpush.msra.mxu1 %v1270_v55  ;;  %v1265_v59 = vsel %vm615_vm13, %v2632_v28, %v2290_v54  ;;  %v1266_v61 = vsel %vm615_vm13, %v2290_v54, %v2291_v56 }
 0x60d   : > { %1319 = vmatpush.msrb.mxu0 %v1265_v59  ;;  %1338 = vmatpush.msra.mxu1 %v1268_v60 }
 0x60e   : > { %1837 = vmatmul.msk.f32.vlgmr.msrb.gmra.mxu0 %vm652_vm14, %v1835_v58 }
 0x60f   : > { %1339 = vmatpush.msra.mxu1 %v1266_v61  ;;  %v1211_v15 = vpop.permute.xlu1 %1210 }
 0x610   : > { %1838 = vmatmul.msk.f32.vlgmr.msra.gmra.mxu1 %vm652_vm14, %v1835_v58 }
 0x68b   : > { %v1321_v3 = vpop.f32.mrf.mxu0 }
 0x68c   : > { %v1322_v5 = vadd.f32 %v1321_v3, %v1211_v15 }
 0x68d   : > { %v1341_v6 = vpop.f32.mrf.mxu1 }
 0x68e   : > { %v1396_v12 = vadd.f32 %v1374_v4, %v1322_v5  ;;  %v1342_v13 = vadd.f32 %v1341_v6, %v1211_v15 }
 0x690   : > { %v1398_v14 = vmax.f32 %v1396_v12, 0.0  ;;  %v1397_v16 = vadd.f32 %v1394_v11, %v1342_v13 }
 0x692   : > { %v1399_v1 = vmax.f32 %v1397_v16, 0.0  ;;  %1654 = vmatpush.xpose.msrb.mxu2 %v1398_v14  ;;  %v1404_v21 = vmul.f32 %v2512_v7, %v1398_v14  ;;  %v1402_v24 = vmul.f32 %v2529_v18, %v1398_v14 }
 0x694   : > { %1674 = vmatpush.xpose.msra.mxu3 %v1399_v1  ;;  %v2292_v22 = vpack.i.bf16 %v1399_v1, %v1398_v14  ;;  %v1405_v29 = vmul.f32 %v2514_v8, %v1399_v1  ;;  %v1403_v30 = vmul.f32 %v2527_v17, %v1399_v1 }
 0x696   : > { %2293 = vrot.lane.b32.xlu1 %v2292_v22, %s2417_s23  ;;  %v2302_v35 = vpack.i.bf16 %v1405_v29, %v1404_v21  ;;  %v2924_v36 = vpack.i.bf16 %v1403_v30, %v1402_v24 }
 0x698   : > { %2303 = vrot.lane.b32.xlu0 %v2302_v35, %s2418_s24  ;;  %2308 = vrot.lane.b32.xlu2 %v2924_v36, %s2419_s25 }
 0x69e   : > { %2298 = vrot.lane.b32.xlu1 %v2292_v22, %s2421_s13  ;;  %s1849_s13 = sshll.u32 %s3031_s22, 4 }
 0x6a0   : > { %2313 = vrot.lane.b32.xlu0 %v2302_v35, %s2420_s30  ;;  %2318 = vrot.lane.b32.xlu2 %v2924_v36, %s2422_s14 }
 0x6a6   : > { %2328 = vrot.lane.b32.xlu1 %v2292_v22, %s2423_s15 }
 0x6a8   : > { %2323 = vrot.lane.b32.xlu0 %v2302_v35, %s2424_s16  ;;  %s424_s16 = scalar_lea.vmem %s3029_s12, %s1849_s13 }
 0x6f2   : > { %v2309_v18 = vpop.permute.xlu2 %2308 }
 0x6f3   : > { %v2311_v41 = vunpack.i.h.bf16 %v2309_v18  ;;  %v2310_v55 = vunpack.i.l.bf16 %v2309_v18 }
 0x6f5   : > { %v1446_v34 = vsel %vm535_vm8, %v2311_v41, %v2550_v25  ;;  %v1445_v63 = vsel %vm535_vm8, %v2310_v55, %v2311_v41 }
 0x6fa   : > { %v2319_v49 = vpop.permute.xlu2 %2318 }
 0x6fb   : > { %v2321_v20 = vunpack.i.h.bf16 %v2319_v49  ;;  %v2320_v53 = vunpack.i.l.bf16 %v2319_v49 }
 0x6fd   : > { %v1429_v25 = vsel %vm511_vm10, %v2320_v53, %v2321_v20  ;;  %v1428_v58 = vsel %vm511_vm10, %v2600_v23, %v2320_v53  ;;  %v2352_v23 = vpack.i.bf16 %v1445_v63, %v2310_v55 }
 0x708   : > { %v2294_v7 = vpop.permute.xlu1 %2293 }
 0x709   : > { %v2296_v8 = vunpack.i.h.bf16 %v2294_v7  ;;  %v2295_v17 = vunpack.i.l.bf16 %v2294_v7 }
 0x70a   : > { %v2304_v37 = vpop.permute.xlu0 %2303 }
 0x70b   : > { %v2306_v38 = vunpack.i.h.bf16 %v2304_v37  ;;  %v1451_v39 = vsel %vm544_vm6, %v2295_v17, %v2296_v8  ;;  %v1452_v26 = vsel %vm544_vm6, %v2296_v8, %v2559_v31 }
 0x70c   : > { %v2332_v27 = vpack.i.bf16 %v1452_v26, %v1451_v39 }
 0x70d   : > { %v1458_v40 = vsel %vm553_vm7, %v2306_v38, %v2564_v33  ;;  %v2305_v33 = vunpack.i.l.bf16 %v2304_v37 }
 0x70e   : > { %2333 = vrot.lane.b32.xlu1 %v2332_v27, %s2425_s17  ;;  %v2347_v19 = vpack.i.bf16 %v2295_v17, %v1458_v40 }
 0x70f   : > { %v1457_v54 = vsel %vm553_vm7, %v2305_v33, %v2306_v38 }
 0x710   : > { %v2299_v42 = vpop.permute.xlu1 %2298  ;;  %2348 = vrot.lane.b32.xlu0 %v2347_v19, %s2425_s17  ;;  %v2342_v56 = vpack.i.bf16 %v1457_v54, %v2305_v33 }
 0x711   : > { %v2301_v43 = vunpack.i.h.bf16 %v2299_v42  ;;  %v2300_v44 = vunpack.i.l.bf16 %v2299_v42 }
 0x712   : > { %v2314_v45 = vpop.permute.xlu0 %2313 }
 0x713   : > { %v1434_v46 = vsel %vm518_vm5, %v2300_v44, %v2301_v43  ;;  %v2316_v47 = vunpack.i.h.bf16 %v2314_v45  ;;  %v2315_v48 = vunpack.i.l.bf16 %v2314_v45  ;;  %v2367_v59 = vpack.i.bf16 %v1428_v58, %v2301_v43 }
 0x714   : > { %v2337_v31 = vpack.i.bf16 %v1434_v46, %v2300_v44 }
 0x715   : > { %v2357_v50 = vpack.i.bf16 %v2315_v48, %v1446_v34  ;;  %v1439_v51 = vsel %vm526_vm9, %v2315_v48, %v2316_v47  ;;  %v1440_v52 = vsel %vm526_vm9, %v2316_v47, %v2562_v32  ;;  %v2377_v32 = vpack.i.bf16 %v2321_v20, %v1429_v25 }
 0x716   : > { %2338 = vrot.lane.b32.xlu2 %v2337_v31, %s2425_s17  ;;  %v2362_v10 = vpack.i.bf16 %v1440_v52, %v1439_v51 }
 0x718   : > { %2363 = vrot.lane.b32.xlu1 %v2362_v10, %s2425_s17  ;;  %2358 = vrot.lane.b32.xlu0 %v2357_v50, %s2425_s17  ;;  %v2329_v57 = vpop.permute.xlu1 %2328 }
 0x719   : > { %v2331_v60 = vunpack.i.h.bf16 %v2329_v57  ;;  %v2330_v61 = vunpack.i.l.bf16 %v2329_v57 }
 0x71a   : > { %v2324_v9 = vpop.permute.xlu0 %2323 }
 0x71b   : > { %v2326_v2 = vunpack.i.h.bf16 %v2324_v9  ;;  %v1413_v15 = vsel %vm489_vm11, %v2330_v61, %v2331_v60  ;;  %v1412_v3 = vsel %vm489_vm11, %v2578_v62, %v2330_v61  ;;  %v2325_v4 = vunpack.i.l.bf16 %v2324_v9  ;;  %v1401_v62 = vld [vmem:[%s3025_s8] sm:$0xff] }
 0x71c   : > { %v2382_v5 = vpack.i.bf16 %v2331_v60, %v1413_v15 }
 0x71d   : > { %v2372_v6 = vpack.i.bf16 %v1412_v3, %v2326_v2  ;;  %v1420_v11 = vsel %vm500_vm12, %v2580_v0, %v2325_v4  ;;  %v1421_v12 = vsel %vm500_vm12, %v2325_v4, %v2326_v2  ;;  %v1400_v3 = vld [vmem:[%s3024_s7] sm:$0xff] }
 0x71e   : > { %2343 = vrot.lane.b32.xlu2 %v2342_v56, %s2425_s17  ;;  %v2387_v13 = vpack.i.bf16 %v1421_v12, %v1420_v11 }
 0x720   : > { %2378 = vrot.lane.b32.xlu1 %v2377_v32, %s2425_s17  ;;  %2368 = vrot.lane.b32.xlu0 %v2367_v59, %s2425_s17 }
 0x726   : > { %2353 = vrot.lane.b32.xlu2 %v2352_v23, %s2425_s17 }
 0x728   : > { %2383 = vrot.lane.b32.xlu1 %v2382_v5, %s2425_s17  ;;  %2373 = vrot.lane.b32.xlu0 %v2372_v6, %s2425_s17 }
 0x72e   : > { %2388 = vrot.lane.b32.xlu2 %v2387_v13, %s2425_s17 }
 0x730   : > { %1461 = vperm.xlu0 %2080, %v1401_v62  }
 0x736   : > { %2393 = vrot.lane.b32.xlu2 %v2924_v36, %s2425_s17 }
 0x770   : > { %v2339_v14 = vpop.permute.xlu2 %2338 }
 0x771   : > { %v2341_v26 = vunpack.i.h.bf16 %v2339_v14  ;;  %v2340_v27 = vunpack.i.l.bf16 %v2339_v14 }
 0x773   : > { %v1524_v48 = vsel %vm615_vm13, %v2340_v27, %v2341_v26 }
 0x778   : > { %v2344_v16 = vpop.permute.xlu2 %2343 }
 0x779   : > { %v2346_v1 = vunpack.i.h.bf16 %v2344_v16  ;;  %v2345_v21 = vunpack.i.l.bf16 %v2344_v16 }
 0x77b   : > { %v1532_v22 = vsel %vm615_vm13, %v2345_v21, %v2346_v1 }
 0x77c   : > { %1562 = vmatpush.msra.mxu0 %v1532_v22 }
 0x780   : > { %v2334_v0 = vpop.permute.xlu1 %2333  ;;  %v2354_v29 = vpop.permute.xlu2 %2353 }
 0x781   : > { %v2336_v24 = vunpack.i.h.bf16 %v2334_v0  ;;  %v2335_v30 = vunpack.i.l.bf16 %v2334_v0  ;;  %v2356_v7 = vunpack.i.h.bf16 %v2354_v29  ;;  %v2355_v8 = vunpack.i.l.bf16 %v2354_v29 }
 0x782   : > { %v2349_v35 = vpop.permute.xlu0 %2348 }
 0x783   : > { %v2351_v17 = vunpack.i.h.bf16 %v2349_v35  ;;  %v2350_v18 = vunpack.i.l.bf16 %v2349_v35  ;;  %v1531_v38 = vsel %vm615_vm13, %v2335_v30, %v2336_v24  ;;  %v1528_v39 = vsel %vm615_vm13, %v2355_v8, %v2356_v7 }
 0x785   : > { %v1530_v37 = vsel %vm615_vm13, %v2351_v17, %v2335_v30  ;;  %v1533_v36 = vsel %vm615_vm13, %v2346_v1, %v2350_v18 }
 0x786   : > { %1563 = vmatpush.msra.mxu0 %v1530_v37  ;;  %1582 = vmatpush.msrb.mxu1 %v1533_v36 }
 0x788   : > { %1583 = vmatpush.msrb.mxu1 %v1531_v38  ;;  %1564 = vmatpush.msra.mxu0 %v1528_v39  ;;  %v2389_v45 = vpop.permute.xlu2 %2388 }
 0x789   : > { %v2391_v31 = vunpack.i.h.bf16 %v2389_v45  ;;  %v2390_v34 = vunpack.i.l.bf16 %v2389_v45 }
 0x78a   : > { %v2364_v40 = vpop.permute.xlu1 %2363  ;;  %v2359_v19 = vpop.permute.xlu0 %2358 }
 0x78b   : > { %v2366_v41 = vunpack.i.h.bf16 %v2364_v40  ;;  %v2365_v42 = vunpack.i.l.bf16 %v2364_v40  ;;  %v2361_v43 = vunpack.i.h.bf16 %v2359_v19  ;;  %v2360_v44 = vunpack.i.l.bf16 %v2359_v19 }
 0x78c   : > { %v1520_v56 = vsel %vm615_vm13, %v2390_v34, %v2391_v31 }
 0x78d   : > { %v1526_v46 = vsel %vm615_vm13, %v2361_v43, %v2365_v42  ;;  %v1529_v47 = vsel %vm615_vm13, %v2356_v7, %v2360_v44  ;;  %v1527_v49 = vsel %vm615_vm13, %v2365_v42, %v2366_v41 }
 0x78e   : > { %1565 = vmatpush.msra.mxu0 %v1526_v46  ;;  %1584 = vmatpush.msrb.mxu1 %v1529_v47  ;;  %v1694_v47 = vld [vmem:[%s3026_s9] sm:$0xff] }
 0x78f   : > { %1717 = vmatpush.msra.mxu2 %v1694_v47 }
 0x790   : > { %1566 = vmatpush.msra.mxu0 %v1524_v48  ;;  %1585 = vmatpush.msrb.mxu1 %v1527_v49  ;;  %v2394_v25 = vpop.permute.xlu2 %2393 }
 0x791   : > { %v2395_v55 = vunpack.i.l.bf16 %v2394_v25  ;;  %v2396_v63 = vunpack.i.h.bf16 %v2394_v25 }
 0x792   : > { %v2379_v33 = vpop.permute.xlu1 %2378  ;;  %v2369_v50 = vpop.permute.xlu0 %2368 }
 0x793   : > { %v2381_v51 = vunpack.i.h.bf16 %v2379_v33  ;;  %v2380_v52 = vunpack.i.l.bf16 %v2379_v33  ;;  %v2371_v10 = vunpack.i.h.bf16 %v2369_v50  ;;  %v2370_v20 = vunpack.i.l.bf16 %v2369_v50 }
 0x794   : > { %v1516_v23 = vsel %vm615_vm13, %v2632_v28, %v2395_v55  ;;  %v1517_v5 = vsel %vm615_vm13, %v2395_v55, %v2396_v63 }
 0x795   : > { %v1522_v53 = vsel %vm615_vm13, %v2371_v10, %v2380_v52  ;;  %v1525_v54 = vsel %vm615_vm13, %v2341_v26, %v2370_v20  ;;  %v1523_v57 = vsel %vm615_vm13, %v2380_v52, %v2381_v51 }
 0x796   : > { %1567 = vmatpush.msra.mxu0 %v1522_v53  ;;  %1586 = vmatpush.msrb.mxu1 %v1525_v54 }
 0x798   : > { %1568 = vmatpush.msra.mxu0 %v1520_v56  ;;  %1587 = vmatpush.msrb.mxu1 %v1523_v57 }
 0x79a   : > { %v2384_v58 = vpop.permute.xlu1 %2383  ;;  %v2374_v32 = vpop.permute.xlu0 %2373 }
 0x79b   : > { %v2386_v59 = vunpack.i.h.bf16 %v2384_v58  ;;  %v2385_v60 = vunpack.i.l.bf16 %v2384_v58  ;;  %v2376_v61 = vunpack.i.h.bf16 %v2374_v32  ;;  %v2375_v9 = vunpack.i.l.bf16 %v2374_v32  ;;  %v2397_v58 = vld [vmem:[%s3027_s10] ss:$0 sm:$0xff] }
 0x79d   : > { %v1518_v2 = vsel %vm615_vm13, %v2376_v61, %v2385_v60  ;;  %v1521_v15 = vsel %vm615_vm13, %v2391_v31, %v2375_v9  ;;  %v1519_v4 = vsel %vm615_vm13, %v2385_v60, %v2386_v59 }
 0x79e   : > { %1569 = vmatpush.msra.mxu0 %v1518_v2  ;;  %1588 = vmatpush.msrb.mxu1 %v1521_v15 }
 0x7a0   : > { %1570 = vmatpush.msra.mxu0 %v1516_v23  ;;  %1589 = vmatpush.msrb.mxu1 %v1519_v4 }
 0x7a1   : > { %1843 = vmatmul.msk.f32.vlgmr.msra.gmra.mxu0 %vm652_vm14, %v1400_v3 }
 0x7a2   : > { %1590 = vmatpush.msrb.mxu1 %v1517_v5  ;;  %v1462_v6 = vpop.permute.xlu0 %1461 }
 0x7a3   : > { %1844 = vmatmul.msk.f32.vlgmr.msrb.gmra.mxu1 %vm652_vm14, %v1400_v3 }
 0x81e   : > { %v1572_v11 = vpop.f32.mrf.mxu0 }
 0x81f   : > { %v1573_v12 = vadd.f32 %v1572_v11, %v1462_v6 }
 0x820   : > { %v1592_v28 = vpop.f32.mrf.mxu1 }
 0x821   : > { %1595 = vst [vmem:[%s424_s16] sm:$0xff] %v1573_v12  ;;  %v1597_v13 = vsub.f32 0.0, %v1573_v12  ;;  %v1593_v62 = vadd.f32 %v1592_v28, %v1462_v6 }
 0x823   : > { %v1599_v14 = vmul.f32 1.442695, %v1597_v13  ;;  %1596 = vst [vmem:[%s424_s16 + $0x8] sm:$0xff] %v1593_v62  ;;  %v1598_v16 = vsub.f32 0.0, %v1593_v62 }
 0x825   : > { %2398 = vpow2.f32 %v1599_v14  ;;  %v1601_v1 = vmul.f32 1.442695, %v1598_v16 }
 0x827   : > { %2400 = vpow2.f32 %v1601_v1 }
 0x82b   : > { %v2399_v21 = vpop.eup %2398 }
 0x82c   : > { %v1603_v22 = vadd.f32 1.0, %v2399_v21 }
 0x82d   : > { %v2401_v0 = vpop.eup %2400 }
 0x82e   : > { %2402 = vrcp.f32 %v1603_v22  ;;  %v1604_v29 = vadd.f32 1.0, %v2401_v0  ;;  %v1616_v17 = vand.u32 2147483648, %v1603_v22  ;;  %v1614_v37 = vand.u32 2147483647, %v1603_v22 }
 0x82f   : > { %vm1610_vm1 = vweird.f32 %v1603_v22 }
 0x830   : > { %2404 = vrcp.f32 %v1604_v29  ;;  %v1631_v38 = vand.u32 2147483648, %v1604_v29  ;;  %v1629_v27 = vand.u32 2147483647, %v1604_v29  ;;  %v1617_v40 = vor.u32 1.1754944e-38, %v1616_v17 }
 0x831   : > { %vm1615_vm4 = vcmp.eq.f32.partialorder %v1614_v37, 8.507059e+37  ;;  %vm1625_vm5 = vweird.f32 %v1604_v29 }
 0x832   : > { %v1632_v43 = vor.u32 1.1754944e-38, %v1631_v38  ;;  %vm1630_vm7 = vcmp.eq.f32.partialorder %v1629_v27, 8.507059e+37 }
 0x834   : > { %v2403_v24 = vpop.eup %2402 }
 0x835   : > { %v1606_v30 = vmul.f32 %v2403_v24, %v1603_v22  ;;  %vm1611_vm0 = vweird.f32 %v2403_v24 }
 0x836   : > { %v2405_v35 = vpop.eup %2404  ;;  %vm1612_vm3 = vmor %vm1610_vm1, %vm1611_vm0 }
 0x837   : > { %v1607_v7 = vsub.f32 1.0, %v1606_v30  ;;  %v1621_v8 = vmul.f32 %v2405_v35, %v1604_v29  ;;  %vm1626_vm2 = vweird.f32 %v2405_v35 }
 0x838   : > { %vm1627_vm6 = vmor %vm1625_vm5, %vm1626_vm2 }
 0x839   : > { %v1608_v18 = vmul.f32 %v2403_v24, %v1607_v7  ;;  %v1622_v36 = vsub.f32 1.0, %v1621_v8 }
 0x83b   : > { %v1609_v39 = vadd.f32 %v2403_v24, %v1608_v18  ;;  %v1623_v26 = vmul.f32 %v2405_v35, %v1622_v36 }
 0x83d   : > { %v1613_v19 = vsel %vm1612_vm3, %v2403_v24, %v1609_v39  ;;  %v1624_v41 = vadd.f32 %v2405_v35, %v1623_v26 }
 0x83e   : > { %v1618_v42 = vsel %vm1615_vm4, %v1617_v40, %v1613_v19 }
 0x83f   : > { %1655 = vmatmul.f32.vlgmr.msrb.gmra.mxu2 %v1618_v42  ;;  %v1628_v44 = vsel %vm1627_vm6, %v2405_v35, %v1624_v41 }
 0x840   : > { %v1633_v45 = vsel %vm1630_vm7, %v1632_v43, %v1628_v44 }
 0x841   : > { %1675 = vmatmul.f32.vlgmr.msra.gmra.mxu3 %v1633_v45  ;;  %v1635_v46 = vadd.f32 %v1633_v45, %v1618_v42 }
 0x843   : > { %1636 = vadd.xlane.f32.xlu1 %v1635_v46 }
 0x8b6   : > { %v1637_v48 = vpop.xlane.xlu1 %1636 }
 0x8b7   : > { %v1638_v49 = vmax.f32 %v1637_v48, 1e-06 }
 0x8b9   : > { %2406 = vrcp.f32 %v1638_v49  ;;  %v1690_v50 = vand.u32 2147483648, %v1638_v49  ;;  %v1688_v52 = vand.u32 2147483647, %v1638_v49  ;;  %vm1684_vm9 = vweird.f32 %v1638_v49 }
 0x8bb   : > { %v1691_v54 = vor.u32 1.1754944e-38, %v1690_v50  ;;  %vm1689_vm11 = vcmp.eq.f32.partialorder %v1688_v52, 8.507059e+37 }
 0x8bf   : > { %v2407_v31 = vpop.eup %2406 }
 0x8c0   : > { %v1680_v34 = vmul.f32 %v2407_v31, %v1638_v49  ;;  %vm1685_vm8 = vweird.f32 %v2407_v31 }
 0x8c1   : > { %vm1686_vm10 = vmor %vm1684_vm9, %vm1685_vm8 }
 0x8c2   : > { %v1681_v33 = vsub.f32 1.0, %v1680_v34  ;;  %v1656_v53 = vpop.f32.mrf.mxu2 }
 0x8c4   : > { %v1682_v51 = vmul.f32 %v2407_v31, %v1681_v33  ;;  %v1676_v10 = vpop.f32.mrf.mxu3 }
 0x8c5   : > { %v1677_v25 = vadd.f32 %v1676_v10, %v1656_v53 }
 0x8c6   : > { %v1683_v20 = vadd.f32 %v2407_v31, %v1682_v51 }
 0x8c8   : > { %v1687_v56 = vsel %vm1686_vm10, %v2407_v31, %v1683_v20 }
 0x8c9   : > { %v1692_v57 = vsel %vm1689_vm11, %v1691_v54, %v1687_v56 }
 0x8ca   : > { %v1693_v55 = vmul.f32 %v1692_v57, %v1677_v25 }
 0x8cc   : > { %1845 = vmatmul.msk.f32.vlgmr.msra.gmra.mxu2 %vm900_vm15, %v1693_v55 }
 0x94f   : > { %v1719_v32 = vpop.f32.mrf.mxu2 }
 0x950   : > { %v1720_v59 = vadd.f32 %v2397_v58, %v1719_v32 }
 0x952   : > { %1722 = vst [vmem:[%s419_s29] sm:$0xff] %v1720_v59 }
 0x953 PF: > { %s23_s21 = sadd.s32 1, %s2414_s21  }
 0x954   : > { %p20_p4 = scmp.ge.s32.totalorder %s23_s21, 4  }
 0x956   :  { %22 = sbr.rel (!%p20_p4) target bundleno = 1 (0x1), region = 112 }

</bundles_post_ra>
